<compile_context>
chip_gen: v7x
topology: tpu7x:2x2x1
jax: 0.10.0
libtpu: 0.0.40
codegen_flags: <defaults>
</compile_context>

<pallas_src>
import functools

import jax
import jax.numpy as jnp
from jax.experimental import pallas as pl
from jax.experimental.pallas import tpu as pltpu


def _round_up(x, m):
    return (x + m - 1) // m * m


def _cdiv(a, b):
    return (a + b - 1) // b


def _dense_block_kernel(x_hbm, w_ref, b_ref, o_ref, xin, gslab, sem, *,
                        n_layers, K, dils, pads, offs, H, TL, L, C0p, Gp):
    """Fused DenseBlock for one (batch, L-tile) grid step.

    x_hbm : (B, L_cover + 2H, C0p) f32 in HBM (memory_space=pl.ANY); input channels only.
    w_ref : (n, K, C0p + (n-1)*Gp, Gp) f32, kernel-resident VMEM; zero pad rows/cols.
    b_ref : (n, 1, Gp) f32, kernel-resident VMEM; zero in padding columns.
    o_ref : (1, TL, n*Gp) f32 output block (growth channels only, lane-dense store).
    xin   : (2, TL+2H, C0p) f32 VMEM staging (double-buffered halo input window).
    gslab : (TL+2H, max(n-1,1)*Gp) f32 VMEM growth-feature slab (layers 0..n-2).
    sem   : DMA semaphores, shape (2,).
    """
    b = pl.program_id(0)
    t = pl.program_id(1)
    n_lt = pl.num_programs(1)
    rows = TL + 2 * H
    slot = t % 2

    def issue(tile_idx, sl):
        pltpu.make_async_copy(
            x_hbm.at[b, pl.ds(tile_idx * TL, rows), :], xin.at[sl], sem.at[sl]
        ).start()

    # Prime this batch element's first tile, prefetch the next one, then wait on current.
    @pl.when(t == 0)
    def _():
        issue(0, slot)

    @pl.when(t + 1 < n_lt)
    def _():
        issue(t + 1, 1 - slot)

    pltpu.make_async_copy(
        x_hbm.at[b, pl.ds(t * TL, rows), :], xin.at[slot], sem.at[slot]
    ).wait()

    xin_cur = xin.at[slot]

    # Original sequence position of each slab row.  Positions outside [0, L) must read
    # zeros for ALL channels (PyTorch's per-layer 'same' zero padding), so layer outputs
    # there are masked to zero below; the HBM input is already zero there.
    pos = t * TL + jax.lax.broadcasted_iota(jnp.int32, (rows, 1), 0) - H
    valid = jnp.logical_and(pos >= 0, pos < L)

    for i in range(n_layers):
        d, p, lo = dils[i], pads[i], offs[i]        # lo is 8-row aligned by construction
        hi = rows - lo
        nrows = hi - lo

        acc = jnp.zeros((nrows, Gp), jnp.float32)
        for k in range(K):                          # dilated conv as K shifted MXU matmuls
            s = lo - p + k * d                      # static slice start
            acc = acc + jnp.dot(xin_cur[s:s + nrows, :], w_ref[i, k, 0:C0p, :],
                                preferred_element_type=jnp.float32)
            if i > 0:
                acc = acc + jnp.dot(gslab[s:s + nrows, 0:i * Gp],
                                    w_ref[i, k, C0p:C0p + i * Gp, :],
                                    preferred_element_type=jnp.float32)

        acc = jnp.maximum(acc + b_ref[i], 0.0)      # bias + ReLU
        acc = jnp.where(valid[lo:hi], acc, 0.0)     # zero outside the real sequence

        if i < n_layers - 1:
            gslab[lo:hi, i * Gp:(i + 1) * Gp] = acc
        else:
            # Last layer's window is exactly the central TL rows -> store straight out.
            o_ref[0, :, i * Gp:(i + 1) * Gp] = acc

    if n_layers > 1:
        # Single lane-dense copy of the earlier layers' central rows (growth lanes only).
        o_ref[0, :, 0:(n_layers - 1) * Gp] = gslab[H:H + TL, 0:(n_layers - 1) * Gp]


def dense_block_forward(x_ncl, params, *, dilation, tile_l=None):
    """DenseBlock.forward.  x_ncl: (B, C, L) as in PyTorch; returns (B, C + n*G, L) f32."""
    B, C0, L = x_ncl.shape
    n = len(params)
    K, _, G = params[0][0].shape
    assert n >= 1
    assert K % 2 == 1, "'same' padding formula assumes odd kernel_size"

    dils = [dilation ** (i + 1) for i in range(n)]
    pads = [d * (K - 1) // 2 for d in dils]          # 'same' padding (odd kernel_size)

    # Cumulative pad offsets, rounded up to sublane (8-row) boundaries.
    offs = []
    cur = 0
    for p in pads:
        cur = _round_up(cur + p, 8)
        offs.append(cur)
    H = offs[-1]                                     # total halo on each side (8-aligned)

    C0p = _round_up(C0, 128)
    Gp = _round_up(G, 128)
    Wrows = C0p + (n - 1) * Gp                       # widest contraction (last layer)

    def _vmem_bytes(tl):
        rows = tl + 2 * H
        return 4 * (2 * rows * C0p                   # double-buffered input staging
                    + rows * max(n - 1, 1) * Gp      # growth slab
                    + 2 * tl * n * Gp                # double-buffered output block
                    + n * K * Wrows * Gp + n * Gp)   # kernel-resident weights + bias

    if tile_l is None:
        tile_l = 1024
        while tile_l > 128 and _vmem_bytes(tile_l) > (40 << 20):
            tile_l //= 2
    tile_l = int(max(8, min(_round_up(tile_l, 8), _round_up(L, 8))))
    n_lt = _cdiv(L, tile_l)
    l_cover = n_lt * tile_l
    rows = tile_l + 2 * H

    # NCL -> NLC; pad input channels to C0p only (NOT the full slab width) and length by
    # the halo (left) / halo + tile remainder (right).  One HBM copy for the whole block.
    x = jnp.transpose(x_ncl, (0, 2, 1)).astype(jnp.float32)
    x_pad = jnp.pad(x, ((0, 0), (H, l_cover - L + H), (0, C0p - C0)))

    # Pack per-layer weights into one zero-padded tensor.  Real channel c of layer j's
    # output lives at contraction row C0p + j*Gp + c; padding rows/cols stay zero so they
    # can never leak into the contraction.
    w_pack = jnp.zeros((n, K, Wrows, Gp), jnp.float32)
    b_pack = jnp.zeros((n, 1, Gp), jnp.float32)
    for i, (w, bias) in enumerate(params):
        w_pack = w_pack.at[i, :, 0:C0, 0:G].set(w[:, 0:C0, :])
        for j in range(i):
            src = w[:, C0 + j * G:C0 + (j + 1) * G, :]
            w_pack = w_pack.at[i, :, C0p + j * Gp:C0p + j * Gp + G, 0:G].set(src)
        b_pack = b_pack.at[i, 0, 0:G].set(bias)

    kernel = functools.partial(
        _dense_block_kernel, n_layers=n, K=K, dils=tuple(dils), pads=tuple(pads),
        offs=tuple(offs), H=H, TL=tile_l, L=L, C0p=C0p, Gp=Gp)

    flops = 0
    for i in range(n):
        nrows_i = tile_l + 2 * (H - offs[i])
        flops += 2 * K * nrows_i * (C0p + i * Gp) * Gp
    flops *= B * n_lt
    bytes_accessed = 4 * (x_pad.size + w_pack.size + b_pack.size + B * l_cover * n * Gp)
    cost = pl.CostEstimate(flops=int(flops), transcendentals=0,
                           bytes_accessed=int(bytes_accessed))

    vmem_limit = int(min(max(2 * _vmem_bytes(tile_l) + (4 << 20), 16 << 20), 64 << 20))

    out_pad = pl.pallas_call(
        kernel,
        out_shape=jax.ShapeDtypeStruct((B, l_cover, n * Gp), jnp.float32),
        grid_spec=pltpu.PrefetchScalarGridSpec(
            num_scalar_prefetch=0,
            grid=(B, n_lt),
            in_specs=[
                pl.BlockSpec(memory_space=pl.ANY),                        # x stays in HBM
                pl.BlockSpec(memory_space=pltpu.MemorySpace.VMEM),        # weights: 1 copy
                pl.BlockSpec(memory_space=pltpu.MemorySpace.VMEM),        # bias: 1 copy
            ],
            out_specs=pl.BlockSpec((1, tile_l, n * Gp), lambda b, t: (b, t, 0)),
            scratch_shapes=[
                pltpu.VMEM((2, rows, C0p), jnp.float32),                  # input staging x2
                pltpu.VMEM((rows, max(n - 1, 1) * Gp), jnp.float32),      # growth slab
                pltpu.SemaphoreType.DMA((2,)),
            ],
        ),
        compiler_params=pltpu.CompilerParams(
            # L-tile axis is "arbitrary": the cross-step input prefetch chain must stay on
            # one core; batch carries the megacore parallelism (keep B >= 2 on v7x).
            dimension_semantics=("parallel", "arbitrary"),
            vmem_limit_bytes=vmem_limit),
        cost_estimate=cost,
    )(x_pad, w_pack, b_pack)

    # Small epilogue: reuse the caller's x for the passthrough channels, pull the real G
    # channels out of each Gp segment, and return NCL as the PyTorch module does.
    # TODO(synk): if the consumer accepts NLC, drop this transpose entirely.
    segs = [x_ncl.astype(jnp.float32)]
    grow = out_pad[:, :L, :]
    for j in range(n):
        segs.append(jnp.transpose(grow[:, :, j * Gp:j * Gp + G], (0, 2, 1)))
    return jnp.concatenate(segs, axis=1)


def init_dense_block_params(key, num_layer, in_channels, growth_rate, kernel_size):
    """Deterministic parameter init (matches the shapes nn.Conv1d would have)."""
    params = []
    for i in range(num_layer):
        cin = in_channels + i * growth_rate
        key, kw, kb = jax.random.split(key, 3)
        fan_in = cin * kernel_size
        w = jax.random.normal(kw, (kernel_size, cin, growth_rate), jnp.float32)
        w = w * (1.0 / jnp.sqrt(fan_in))
        b = 0.01 * jax.random.normal(kb, (growth_rate,), jnp.float32)
        params.append((w, b))
    return params


def _reference_dense_block(x_ncl, params, *, dilation):
    """Pure-JAX f32 reference (conv 'same' + bias + ReLU + dense concat per layer)."""
    x = x_ncl.astype(jnp.float32)
    B, _, L = x.shape
    for i, (w, b) in enumerate(params):
        d = dilation ** (i + 1)
        K, _, G = w.shape
        p = d * (K - 1) // 2
        xp = jnp.pad(x, ((0, 0), (0, 0), (p, p)))
        y = jnp.zeros((B, G, L), jnp.float32)
        for k in range(K):
            xs = xp[:, :, k * d:k * d + L]
            y = y + jnp.einsum("bcl,cg->bgl", xs, w[k])
        y = jnp.maximum(y + b[None, :, None], 0.0)
        x = jnp.concatenate([x, y], axis=1)
    return x


if __name__ == "__main__":
    # Small, forward-consistent config that exercises multiple L-tiles (prefetch path),
    # halo crossing tile boundaries and the out-of-sequence tail mask.
    num_layer = 3
    in_channels = 8
    growth_rate = 8
    kernel_size = 3
    dilation = 2
    B, L = 2, 40

    key = jax.random.PRNGKey(0)
    kx, kp = jax.random.split(key)
    x = jax.random.normal(kx, (B, in_channels, L), jnp.float32)    # NCL, as in PyTorch

    params = init_dense_block_params(
        kp, num_layer, in_channels, growth_rate, kernel_size)

    fwd = jax.jit(functools.partial(dense_block_forward, dilation=dilation, tile_l=16))
    y = jax.block_until_ready(fwd(x, params))

    expected_c = in_channels + num_layer * growth_rate
    assert y.shape == (B, expected_c, L), y.shape
    assert bool(jnp.all(jnp.isfinite(y)))

    y_ref = _reference_dense_block(x, params, dilation=dilation)
    max_err = float(jnp.max(jnp.abs(y - y_ref)))
    assert max_err < 1e-3, f"max abs error vs reference: {max_err}"

    print("KERNEL_OK")
</pallas_src>

<mosaic_0001>
module attributes {stable_mosaic.version = 11 : i64} {
  func.func @_dense_block_kernel(%arg0: i32, %arg1: i32, %arg2: memref<2x96x128xf32, #tpu.memory_space<any>>, %arg3: memref<3x3x384x128xf32, #tpu.memory_space<vmem>>, %arg4: memref<3x1x128xf32, #tpu.memory_space<vmem>>, %arg5: memref<1x16x384xf32, #tpu.memory_space<vmem>>, %arg6: memref<2x64x128xf32, #tpu.memory_space<vmem>>, %arg7: memref<64x256xf32, #tpu.memory_space<vmem>>, %arg8: memref<2x!tpu.dma_semaphore, #tpu.memory_space<semaphore_mem>>) attributes {dimension_semantics = [#tpu.dimension_semantics<parallel>, #tpu.dimension_semantics<arbitrary>], iteration_bounds = array<i64: 2, 3>, scalar_prefetch = 0 : i64, scratch_operands = 3 : i64, tpu.core_type = #tpu.core_type<tc>, window_params = [{}, {pipeline_mode = #tpu.pipeline_mode<synchronous>, transform_indices = @transform_1, window_bounds = array<i64: 3, 3, 384, 128>}, {pipeline_mode = #tpu.pipeline_mode<synchronous>, transform_indices = @transform_2, window_bounds = array<i64: 3, 1, 128>}, {transform_indices = @transform_3, window_bounds = array<i64: 1, 16, 384>}]} {
    %c2_i32 = arith.constant 2 : i32
    %c0_i32 = arith.constant 0 : i32
    %0 = arith.cmpi eq, %c2_i32, %c0_i32 : i32
    %c1_i32 = arith.constant 1 : i32
    %1 = arith.select %0, %c1_i32, %c2_i32 : i32
    %2 = arith.remsi %arg1, %1 : i32
    %c0_i32_0 = arith.constant 0 : i32
    %3 = arith.cmpi ne, %2, %c0_i32_0 : i32
    %c0_i32_1 = arith.constant 0 : i32
    %4 = arith.cmpi slt, %2, %c0_i32_1 : i32
    %c0_i32_2 = arith.constant 0 : i32
    %5 = arith.cmpi slt, %1, %c0_i32_2 : i32
    %6 = arith.xori %4, %5 : i1
    %7 = arith.andi %6, %3 : i1
    %8 = arith.addi %2, %1 : i32
    %9 = arith.select %7, %8, %2 : i32
    %c0_i32_3 = arith.constant 0 : i32
    %10 = arith.cmpi eq, %arg1, %c0_i32_3 : i32
    %11 = arith.extui %10 : i1 to i32
    %c0_i32_4 = arith.constant 0 : i32
    %12 = arith.cmpi ne, %11, %c0_i32_4 : i32
    scf.if %12 {
      %c0_i32_151 = arith.constant 0 : i32
      %c0_i32_152 = arith.constant 0 : i32
      %173 = tpu.memref_slice %arg2[%arg0, %c0_i32_151, %c0_i32_152] : memref<2x96x128xf32, #tpu.memory_space<any>> -> memref<1x64x128xf32, #tpu.memory_space<any>>
      %174 = tpu.memref_squeeze %173 : memref<1x64x128xf32, #tpu.memory_space<any>> -> memref<64x128xf32, #tpu.memory_space<any>>
      %c0_i32_153 = arith.constant 0 : i32
      %c0_i32_154 = arith.constant 0 : i32
      %175 = tpu.memref_slice %arg6[%9, %c0_i32_153, %c0_i32_154] : memref<2x64x128xf32, #tpu.memory_space<vmem>> -> memref<1x64x128xf32, #tpu.memory_space<vmem>>
      %176 = tpu.memref_squeeze %175 : memref<1x64x128xf32, #tpu.memory_space<vmem>> -> memref<64x128xf32, #tpu.memory_space<vmem>>
      %177 = tpu.memref_slice %arg8[%9] : memref<2x!tpu.dma_semaphore, #tpu.memory_space<semaphore_mem>> -> memref<1x!tpu.dma_semaphore, #tpu.memory_space<semaphore_mem>>
      %178 = tpu.memref_squeeze %177 : memref<1x!tpu.dma_semaphore, #tpu.memory_space<semaphore_mem>> -> memref<!tpu.dma_semaphore, #tpu.memory_space<semaphore_mem>>
      tpu.enqueue_dma source(%174 : memref<64x128xf32, #tpu.memory_space<any>>) target(%176 : memref<64x128xf32, #tpu.memory_space<vmem>>) target_semaphore(%178 : memref<!tpu.dma_semaphore, #tpu.memory_space<semaphore_mem>>)
    } else {
    }
    %c1_i32_5 = arith.constant 1 : i32
    %13 = arith.addi %arg1, %c1_i32_5 : i32
    %c3_i32 = arith.constant 3 : i32
    %14 = arith.cmpi slt, %13, %c3_i32 : i32
    %15 = arith.extui %14 : i1 to i32
    %c0_i32_6 = arith.constant 0 : i32
    %16 = arith.cmpi ne, %15, %c0_i32_6 : i32
    scf.if %16 {
      %c1_i32_151 = arith.constant 1 : i32
      %173 = arith.addi %arg1, %c1_i32_151 : i32
      %c1_i32_152 = arith.constant 1 : i32
      %174 = arith.subi %c1_i32_152, %9 : i32
      %c16_i32_153 = arith.constant 16 : i32
      %175 = arith.muli %173, %c16_i32_153 : i32
      %c0_i32_154 = arith.constant 0 : i32
      %176 = tpu.memref_slice %arg2[%arg0, %175, %c0_i32_154] : memref<2x96x128xf32, #tpu.memory_space<any>> -> memref<1x64x128xf32, #tpu.memory_space<any>>
      %177 = tpu.memref_squeeze %176 : memref<1x64x128xf32, #tpu.memory_space<any>> -> memref<64x128xf32, #tpu.memory_space<any>>
      %c0_i32_155 = arith.constant 0 : i32
      %c0_i32_156 = arith.constant 0 : i32
      %178 = tpu.memref_slice %arg6[%174, %c0_i32_155, %c0_i32_156] : memref<2x64x128xf32, #tpu.memory_space<vmem>> -> memref<1x64x128xf32, #tpu.memory_space<vmem>>
      %179 = tpu.memref_squeeze %178 : memref<1x64x128xf32, #tpu.memory_space<vmem>> -> memref<64x128xf32, #tpu.memory_space<vmem>>
      %180 = tpu.memref_slice %arg8[%174] : memref<2x!tpu.dma_semaphore, #tpu.memory_space<semaphore_mem>> -> memref<1x!tpu.dma_semaphore, #tpu.memory_space<semaphore_mem>>
      %181 = tpu.memref_squeeze %180 : memref<1x!tpu.dma_semaphore, #tpu.memory_space<semaphore_mem>> -> memref<!tpu.dma_semaphore, #tpu.memory_space<semaphore_mem>>
      tpu.enqueue_dma source(%177 : memref<64x128xf32, #tpu.memory_space<any>>) target(%179 : memref<64x128xf32, #tpu.memory_space<vmem>>) target_semaphore(%181 : memref<!tpu.dma_semaphore, #tpu.memory_space<semaphore_mem>>)
    } else {
    }
    %c16_i32 = arith.constant 16 : i32
    %17 = arith.muli %arg1, %c16_i32 : i32
    %c0_i32_7 = arith.constant 0 : i32
    %18 = tpu.memref_slice %arg2[%arg0, %17, %c0_i32_7] : memref<2x96x128xf32, #tpu.memory_space<any>> -> memref<1x64x128xf32, #tpu.memory_space<any>>
    %19 = tpu.memref_squeeze %18 : memref<1x64x128xf32, #tpu.memory_space<any>> -> memref<64x128xf32, #tpu.memory_space<any>>
    %c0_i32_8 = arith.constant 0 : i32
    %c0_i32_9 = arith.constant 0 : i32
    %20 = tpu.memref_slice %arg6[%9, %c0_i32_8, %c0_i32_9] : memref<2x64x128xf32, #tpu.memory_space<vmem>> -> memref<1x64x128xf32, #tpu.memory_space<vmem>>
    %21 = tpu.memref_squeeze %20 : memref<1x64x128xf32, #tpu.memory_space<vmem>> -> memref<64x128xf32, #tpu.memory_space<vmem>>
    %22 = tpu.memref_slice %arg8[%9] : memref<2x!tpu.dma_semaphore, #tpu.memory_space<semaphore_mem>> -> memref<1x!tpu.dma_semaphore, #tpu.memory_space<semaphore_mem>>
    %23 = tpu.memref_squeeze %22 : memref<1x!tpu.dma_semaphore, #tpu.memory_space<semaphore_mem>> -> memref<!tpu.dma_semaphore, #tpu.memory_space<semaphore_mem>>
    tpu.wait_dma2 semaphore(%23 : memref<!tpu.dma_semaphore, #tpu.memory_space<semaphore_mem>>) src(%19 : memref<64x128xf32, #tpu.memory_space<any>>) dst(%21 : memref<64x128xf32, #tpu.memory_space<vmem>>)
    %c16_i32_10 = arith.constant 16 : i32
    %24 = arith.muli %arg1, %c16_i32_10 : i32
    %25 = tpu.iota {dimensions = array<i32: 0>} : vector<64x1xi32>
    %26 = vector.broadcast %24 : i32 to vector<64x1xi32>
    %27 = arith.addi %26, %25 : vector<64x1xi32>
    %c24_i32 = arith.constant 24 : i32
    %28 = vector.broadcast %c24_i32 : i32 to vector<64x1xi32>
    %29 = arith.subi %27, %28 : vector<64x1xi32>
    %c0_i32_11 = arith.constant 0 : i32
    %30 = vector.broadcast %c0_i32_11 : i32 to vector<64x1xi32>
    %31 = arith.cmpi sge, %29, %30 : vector<64x1xi32>
    %c40_i32 = arith.constant 40 : i32
    %32 = vector.broadcast %c40_i32 : i32 to vector<64x1xi32>
    %33 = arith.cmpi slt, %29, %32 : vector<64x1xi32>
    %34 = arith.andi %31, %33 : vector<64x1xi1>
    %cst = arith.constant 0.000000e+00 : f32
    %35 = vector.broadcast %cst : f32 to vector<48x128xf32>
    %c0_i32_12 = arith.constant 0 : i32
    %c0_i32_13 = arith.constant 0 : i32
    %36 = tpu.memref_slice %arg6[%9, %c0_i32_12, %c0_i32_13] : memref<2x64x128xf32, #tpu.memory_space<vmem>> -> memref<1x64x128xf32, #tpu.memory_space<vmem>>
    %37 = tpu.memref_squeeze %36 : memref<1x64x128xf32, #tpu.memory_space<vmem>> -> memref<64x128xf32, #tpu.memory_space<vmem>>
    %c6 = arith.constant 6 : index
    %c0 = arith.constant 0 : index
    %38 = vector.load %37[%c6, %c0] : memref<64x128xf32, #tpu.memory_space<vmem>>, vector<48x128xf32>
    %c0_14 = arith.constant 0 : index
    %c0_15 = arith.constant 0 : index
    %c0_16 = arith.constant 0 : index
    %c0_17 = arith.constant 0 : index
    %39 = vector.load %arg3[%c0_14, %c0_15, %c0_16, %c0_17] : memref<3x3x384x128xf32, #tpu.memory_space<vmem>>, vector<1x1x128x128xf32>
    %40 = vector.shape_cast %39 : vector<1x1x128x128xf32> to vector<128x128xf32>
    %cst_18 = arith.constant dense<0.000000e+00> : vector<48x128xf32>
    %41 = tpu.matmul %38, %40, %cst_18 {dimension_numbers = #tpu.dot_dimension_numbers<[1], [0], [0], [1], [0, 0, 1, 1], [], []>} : vector<48x128xf32>, vector<128x128xf32>, vector<48x128xf32> -> vector<48x128xf32>
    %42 = arith.addf %35, %41 : vector<48x128xf32>
    %c0_i32_19 = arith.constant 0 : i32
    %c0_i32_20 = arith.constant 0 : i32
    %43 = tpu.memref_slice %arg6[%9, %c0_i32_19, %c0_i32_20] : memref<2x64x128xf32, #tpu.memory_space<vmem>> -> memref<1x64x128xf32, #tpu.memory_space<vmem>>
    %44 = tpu.memref_squeeze %43 : memref<1x64x128xf32, #tpu.memory_space<vmem>> -> memref<64x128xf32, #tpu.memory_space<vmem>>
    %c8 = arith.constant 8 : index
    %c0_21 = arith.constant 0 : index
    %45 = vector.load %44[%c8, %c0_21] : memref<64x128xf32, #tpu.memory_space<vmem>>, vector<48x128xf32>
    %c0_22 = arith.constant 0 : index
    %c1 = arith.constant 1 : index
    %c0_23 = arith.constant 0 : index
    %c0_24 = arith.constant 0 : index
    %46 = vector.load %arg3[%c0_22, %c1, %c0_23, %c0_24] : memref<3x3x384x128xf32, #tpu.memory_space<vmem>>, vector<1x1x128x128xf32>
    %47 = vector.shape_cast %46 : vector<1x1x128x128xf32> to vector<128x128xf32>
    %cst_25 = arith.constant dense<0.000000e+00> : vector<48x128xf32>
    %48 = tpu.matmul %45, %47, %cst_25 {dimension_numbers = #tpu.dot_dimension_numbers<[1], [0], [0], [1], [0, 0, 1, 1], [], []>} : vector<48x128xf32>, vector<128x128xf32>, vector<48x128xf32> -> vector<48x128xf32>
    %49 = arith.addf %42, %48 : vector<48x128xf32>
    %c0_i32_26 = arith.constant 0 : i32
    %c0_i32_27 = arith.constant 0 : i32
    %50 = tpu.memref_slice %arg6[%9, %c0_i32_26, %c0_i32_27] : memref<2x64x128xf32, #tpu.memory_space<vmem>> -> memref<1x64x128xf32, #tpu.memory_space<vmem>>
    %51 = tpu.memref_squeeze %50 : memref<1x64x128xf32, #tpu.memory_space<vmem>> -> memref<64x128xf32, #tpu.memory_space<vmem>>
    %c10 = arith.constant 10 : index
    %c0_28 = arith.constant 0 : index
    %52 = vector.load %51[%c10, %c0_28] : memref<64x128xf32, #tpu.memory_space<vmem>>, vector<48x128xf32>
    %c0_29 = arith.constant 0 : index
    %c2 = arith.constant 2 : index
    %c0_30 = arith.constant 0 : index
    %c0_31 = arith.constant 0 : index
    %53 = vector.load %arg3[%c0_29, %c2, %c0_30, %c0_31] : memref<3x3x384x128xf32, #tpu.memory_space<vmem>>, vector<1x1x128x128xf32>
    %54 = vector.shape_cast %53 : vector<1x1x128x128xf32> to vector<128x128xf32>
    %cst_32 = arith.constant dense<0.000000e+00> : vector<48x128xf32>
    %55 = tpu.matmul %52, %54, %cst_32 {dimension_numbers = #tpu.dot_dimension_numbers<[1], [0], [0], [1], [0, 0, 1, 1], [], []>} : vector<48x128xf32>, vector<128x128xf32>, vector<48x128xf32> -> vector<48x128xf32>
    %56 = arith.addf %49, %55 : vector<48x128xf32>
    %c0_33 = arith.constant 0 : index
    %c0_34 = arith.constant 0 : index
    %c0_35 = arith.constant 0 : index
    %57 = vector.load %arg4[%c0_33, %c0_34, %c0_35] : memref<3x1x128xf32, #tpu.memory_space<vmem>>, vector<1x1x128xf32>
    %58 = vector.shape_cast %57 : vector<1x1x128xf32> to vector<1x128xf32>
    %59 = vector.broadcast %58 : vector<1x128xf32> to vector<48x128xf32>
    %60 = arith.addf %56, %59 : vector<48x128xf32>
    %cst_36 = arith.constant 0.000000e+00 : f32
    %61 = vector.broadcast %cst_36 : f32 to vector<48x128xf32>
    %62 = arith.maximumf %60, %61 : vector<48x128xf32>
    %63 = vector.extract_strided_slice %34 {offsets = [8, 0], sizes = [48, 1], strides = [1, 1]} : vector<64x1xi1> to vector<48x1xi1>
    %cst_37 = arith.constant 0.000000e+00 : f32
    %64 = vector.shape_cast %63 : vector<48x1xi1> to vector<48x1xi1>
    %65 = vector.broadcast %64 : vector<48x1xi1> to vector<48x128xi1>
    %66 = vector.broadcast %cst_37 : f32 to vector<48x128xf32>
    %67 = arith.select %65, %62, %66 : vector<48x128xi1>, vector<48x128xf32>
    %c8_38 = arith.constant 8 : index
    %c0_39 = arith.constant 0 : index
    %68 = vector.load %arg7[%c8_38, %c0_39] : memref<64x256xf32, #tpu.memory_space<vmem>>, vector<48x128xf32>
    tpu.vector_store %arg7[%c8_38, %c0_39], %67 {strides = array<i32>} : memref<64x256xf32, #tpu.memory_space<vmem>>, vector<48x128xf32>,
    %cst_40 = arith.constant 0.000000e+00 : f32
    %69 = vector.broadcast %cst_40 : f32 to vector<32x128xf32>
    %c0_i32_41 = arith.constant 0 : i32
    %c0_i32_42 = arith.constant 0 : i32
    %70 = tpu.memref_slice %arg6[%9, %c0_i32_41, %c0_i32_42] : memref<2x64x128xf32, #tpu.memory_space<vmem>> -> memref<1x64x128xf32, #tpu.memory_space<vmem>>
    %71 = tpu.memref_squeeze %70 : memref<1x64x128xf32, #tpu.memory_space<vmem>> -> memref<64x128xf32, #tpu.memory_space<vmem>>
    %c12 = arith.constant 12 : index
    %c0_43 = arith.constant 0 : index
    %72 = vector.load %71[%c12, %c0_43] : memref<64x128xf32, #tpu.memory_space<vmem>>, vector<32x128xf32>
    %c1_44 = arith.constant 1 : index
    %c0_45 = arith.constant 0 : index
    %c0_46 = arith.constant 0 : index
    %c0_47 = arith.constant 0 : index
    %73 = vector.load %arg3[%c1_44, %c0_45, %c0_46, %c0_47] : memref<3x3x384x128xf32, #tpu.memory_space<vmem>>, vector<1x1x128x128xf32>
    %74 = vector.shape_cast %73 : vector<1x1x128x128xf32> to vector<128x128xf32>
    %cst_48 = arith.constant dense<0.000000e+00> : vector<32x128xf32>
    %75 = tpu.matmul %72, %74, %cst_48 {dimension_numbers = #tpu.dot_dimension_numbers<[1], [0], [0], [1], [0, 0, 1, 1], [], []>} : vector<32x128xf32>, vector<128x128xf32>, vector<32x128xf32> -> vector<32x128xf32>
    %76 = arith.addf %69, %75 : vector<32x128xf32>
    %c12_49 = arith.constant 12 : index
    %c0_50 = arith.constant 0 : index
    %77 = vector.load %arg7[%c12_49, %c0_50] : memref<64x256xf32, #tpu.memory_space<vmem>>, vector<32x128xf32>
    %c1_51 = arith.constant 1 : index
    %c0_52 = arith.constant 0 : index
    %c128 = arith.constant 128 : index
    %c0_53 = arith.constant 0 : index
    %78 = vector.load %arg3[%c1_51, %c0_52, %c128, %c0_53] : memref<3x3x384x128xf32, #tpu.memory_space<vmem>>, vector<1x1x128x128xf32>
    %79 = vector.shape_cast %78 : vector<1x1x128x128xf32> to vector<128x128xf32>
    %cst_54 = arith.constant dense<0.000000e+00> : vector<32x128xf32>
    %80 = tpu.matmul %77, %79, %cst_54 {dimension_numbers = #tpu.dot_dimension_numbers<[1], [0], [0], [1], [0, 0, 1, 1], [], []>} : vector<32x128xf32>, vector<128x128xf32>, vector<32x128xf32> -> vector<32x128xf32>
    %81 = arith.addf %76, %80 : vector<32x128xf32>
    %c0_i32_55 = arith.constant 0 : i32
    %c0_i32_56 = arith.constant 0 : i32
    %82 = tpu.memref_slice %arg6[%9, %c0_i32_55, %c0_i32_56] : memref<2x64x128xf32, #tpu.memory_space<vmem>> -> memref<1x64x128xf32, #tpu.memory_space<vmem>>
    %83 = tpu.memref_squeeze %82 : memref<1x64x128xf32, #tpu.memory_space<vmem>> -> memref<64x128xf32, #tpu.memory_space<vmem>>
    %c16 = arith.constant 16 : index
    %c0_57 = arith.constant 0 : index
    %84 = vector.load %83[%c16, %c0_57] : memref<64x128xf32, #tpu.memory_space<vmem>>, vector<32x128xf32>
    %c1_58 = arith.constant 1 : index
    %c1_59 = arith.constant 1 : index
    %c0_60 = arith.constant 0 : index
    %c0_61 = arith.constant 0 : index
    %85 = vector.load %arg3[%c1_58, %c1_59, %c0_60, %c0_61] : memref<3x3x384x128xf32, #tpu.memory_space<vmem>>, vector<1x1x128x128xf32>
    %86 = vector.shape_cast %85 : vector<1x1x128x128xf32> to vector<128x128xf32>
    %cst_62 = arith.constant dense<0.000000e+00> : vector<32x128xf32>
    %87 = tpu.matmul %84, %86, %cst_62 {dimension_numbers = #tpu.dot_dimension_numbers<[1], [0], [0], [1], [0, 0, 1, 1], [], []>} : vector<32x128xf32>, vector<128x128xf32>, vector<32x128xf32> -> vector<32x128xf32>
    %88 = arith.addf %81, %87 : vector<32x128xf32>
    %c16_63 = arith.constant 16 : index
    %c0_64 = arith.constant 0 : index
    %89 = vector.load %arg7[%c16_63, %c0_64] : memref<64x256xf32, #tpu.memory_space<vmem>>, vector<32x128xf32>
    %c1_65 = arith.constant 1 : index
    %c1_66 = arith.constant 1 : index
    %c128_67 = arith.constant 128 : index
    %c0_68 = arith.constant 0 : index
    %90 = vector.load %arg3[%c1_65, %c1_66, %c128_67, %c0_68] : memref<3x3x384x128xf32, #tpu.memory_space<vmem>>, vector<1x1x128x128xf32>
    %91 = vector.shape_cast %90 : vector<1x1x128x128xf32> to vector<128x128xf32>
    %cst_69 = arith.constant dense<0.000000e+00> : vector<32x128xf32>
    %92 = tpu.matmul %89, %91, %cst_69 {dimension_numbers = #tpu.dot_dimension_numbers<[1], [0], [0], [1], [0, 0, 1, 1], [], []>} : vector<32x128xf32>, vector<128x128xf32>, vector<32x128xf32> -> vector<32x128xf32>
    %93 = arith.addf %88, %92 : vector<32x128xf32>
    %c0_i32_70 = arith.constant 0 : i32
    %c0_i32_71 = arith.constant 0 : i32
    %94 = tpu.memref_slice %arg6[%9, %c0_i32_70, %c0_i32_71] : memref<2x64x128xf32, #tpu.memory_space<vmem>> -> memref<1x64x128xf32, #tpu.memory_space<vmem>>
    %95 = tpu.memref_squeeze %94 : memref<1x64x128xf32, #tpu.memory_space<vmem>> -> memref<64x128xf32, #tpu.memory_space<vmem>>
    %c20 = arith.constant 20 : index
    %c0_72 = arith.constant 0 : index
    %96 = vector.load %95[%c20, %c0_72] : memref<64x128xf32, #tpu.memory_space<vmem>>, vector<32x128xf32>
    %c1_73 = arith.constant 1 : index
    %c2_74 = arith.constant 2 : index
    %c0_75 = arith.constant 0 : index
    %c0_76 = arith.constant 0 : index
    %97 = vector.load %arg3[%c1_73, %c2_74, %c0_75, %c0_76] : memref<3x3x384x128xf32, #tpu.memory_space<vmem>>, vector<1x1x128x128xf32>
    %98 = vector.shape_cast %97 : vector<1x1x128x128xf32> to vector<128x128xf32>
    %cst_77 = arith.constant dense<0.000000e+00> : vector<32x128xf32>
    %99 = tpu.matmul %96, %98, %cst_77 {dimension_numbers = #tpu.dot_dimension_numbers<[1], [0], [0], [1], [0, 0, 1, 1], [], []>} : vector<32x128xf32>, vector<128x128xf32>, vector<32x128xf32> -> vector<32x128xf32>
    %100 = arith.addf %93, %99 : vector<32x128xf32>
    %c20_78 = arith.constant 20 : index
    %c0_79 = arith.constant 0 : index
    %101 = vector.load %arg7[%c20_78, %c0_79] : memref<64x256xf32, #tpu.memory_space<vmem>>, vector<32x128xf32>
    %c1_80 = arith.constant 1 : index
    %c2_81 = arith.constant 2 : index
    %c128_82 = arith.constant 128 : index
    %c0_83 = arith.constant 0 : index
    %102 = vector.load %arg3[%c1_80, %c2_81, %c128_82, %c0_83] : memref<3x3x384x128xf32, #tpu.memory_space<vmem>>, vector<1x1x128x128xf32>
    %103 = vector.shape_cast %102 : vector<1x1x128x128xf32> to vector<128x128xf32>
    %cst_84 = arith.constant dense<0.000000e+00> : vector<32x128xf32>
    %104 = tpu.matmul %101, %103, %cst_84 {dimension_numbers = #tpu.dot_dimension_numbers<[1], [0], [0], [1], [0, 0, 1, 1], [], []>} : vector<32x128xf32>, vector<128x128xf32>, vector<32x128xf32> -> vector<32x128xf32>
    %105 = arith.addf %100, %104 : vector<32x128xf32>
    %c1_85 = arith.constant 1 : index
    %c0_86 = arith.constant 0 : index
    %c0_87 = arith.constant 0 : index
    %106 = vector.load %arg4[%c1_85, %c0_86, %c0_87] : memref<3x1x128xf32, #tpu.memory_space<vmem>>, vector<1x1x128xf32>
    %107 = vector.shape_cast %106 : vector<1x1x128xf32> to vector<1x128xf32>
    %108 = vector.broadcast %107 : vector<1x128xf32> to vector<32x128xf32>
    %109 = arith.addf %105, %108 : vector<32x128xf32>
    %cst_88 = arith.constant 0.000000e+00 : f32
    %110 = vector.broadcast %cst_88 : f32 to vector<32x128xf32>
    %111 = arith.maximumf %109, %110 : vector<32x128xf32>
    %112 = vector.extract_strided_slice %34 {offsets = [16, 0], sizes = [32, 1], strides = [1, 1]} : vector<64x1xi1> to vector<32x1xi1>
    %cst_89 = arith.constant 0.000000e+00 : f32
    %113 = vector.shape_cast %112 : vector<32x1xi1> to vector<32x1xi1>
    %114 = vector.broadcast %113 : vector<32x1xi1> to vector<32x128xi1>
    %115 = vector.broadcast %cst_89 : f32 to vector<32x128xf32>
    %116 = arith.select %114, %111, %115 : vector<32x128xi1>, vector<32x128xf32>
    %c16_90 = arith.constant 16 : index
    %c128_91 = arith.constant 128 : index
    %117 = vector.load %arg7[%c16_90, %c128_91] : memref<64x256xf32, #tpu.memory_space<vmem>>, vector<32x128xf32>
    tpu.vector_store %arg7[%c16_90, %c128_91], %116 {strides = array<i32>} : memref<64x256xf32, #tpu.memory_space<vmem>>, vector<32x128xf32>,
    %cst_92 = arith.constant 0.000000e+00 : f32
    %118 = vector.broadcast %cst_92 : f32 to vector<16x128xf32>
    %c0_i32_93 = arith.constant 0 : i32
    %c0_i32_94 = arith.constant 0 : i32
    %119 = tpu.memref_slice %arg6[%9, %c0_i32_93, %c0_i32_94] : memref<2x64x128xf32, #tpu.memory_space<vmem>> -> memref<1x64x128xf32, #tpu.memory_space<vmem>>
    %120 = tpu.memref_squeeze %119 : memref<1x64x128xf32, #tpu.memory_space<vmem>> -> memref<64x128xf32, #tpu.memory_space<vmem>>
    %c16_95 = arith.constant 16 : index
    %c0_96 = arith.constant 0 : index
    %121 = vector.load %120[%c16_95, %c0_96] : memref<64x128xf32, #tpu.memory_space<vmem>>, vector<16x128xf32>
    %c2_97 = arith.constant 2 : index
    %c0_98 = arith.constant 0 : index
    %c0_99 = arith.constant 0 : index
    %c0_100 = arith.constant 0 : index
    %122 = vector.load %arg3[%c2_97, %c0_98, %c0_99, %c0_100] : memref<3x3x384x128xf32, #tpu.memory_space<vmem>>, vector<1x1x128x128xf32>
    %123 = vector.shape_cast %122 : vector<1x1x128x128xf32> to vector<128x128xf32>
    %cst_101 = arith.constant dense<0.000000e+00> : vector<16x128xf32>
    %124 = tpu.matmul %121, %123, %cst_101 {dimension_numbers = #tpu.dot_dimension_numbers<[1], [0], [0], [1], [0, 0, 1, 1], [], []>} : vector<16x128xf32>, vector<128x128xf32>, vector<16x128xf32> -> vector<16x128xf32>
    %125 = arith.addf %118, %124 : vector<16x128xf32>
    %c16_102 = arith.constant 16 : index
    %c0_103 = arith.constant 0 : index
    %126 = vector.load %arg7[%c16_102, %c0_103] : memref<64x256xf32, #tpu.memory_space<vmem>>, vector<16x256xf32>
    %c2_104 = arith.constant 2 : index
    %c0_105 = arith.constant 0 : index
    %c128_106 = arith.constant 128 : index
    %c0_107 = arith.constant 0 : index
    %127 = vector.load %arg3[%c2_104, %c0_105, %c128_106, %c0_107] : memref<3x3x384x128xf32, #tpu.memory_space<vmem>>, vector<1x1x256x128xf32>
    %128 = vector.shape_cast %127 : vector<1x1x256x128xf32> to vector<256x128xf32>
    %cst_108 = arith.constant dense<0.000000e+00> : vector<16x128xf32>
    %129 = tpu.matmul %126, %128, %cst_108 {dimension_numbers = #tpu.dot_dimension_numbers<[1], [0], [0], [1], [0, 0, 1, 1], [], []>} : vector<16x256xf32>, vector<256x128xf32>, vector<16x128xf32> -> vector<16x128xf32>
    %130 = arith.addf %125, %129 : vector<16x128xf32>
    %c0_i32_109 = arith.constant 0 : i32
    %c0_i32_110 = arith.constant 0 : i32
    %131 = tpu.memref_slice %arg6[%9, %c0_i32_109, %c0_i32_110] : memref<2x64x128xf32, #tpu.memory_space<vmem>> -> memref<1x64x128xf32, #tpu.memory_space<vmem>>
    %132 = tpu.memref_squeeze %131 : memref<1x64x128xf32, #tpu.memory_space<vmem>> -> memref<64x128xf32, #tpu.memory_space<vmem>>
    %c24 = arith.constant 24 : index
    %c0_111 = arith.constant 0 : index
    %133 = vector.load %132[%c24, %c0_111] : memref<64x128xf32, #tpu.memory_space<vmem>>, vector<16x128xf32>
    %c2_112 = arith.constant 2 : index
    %c1_113 = arith.constant 1 : index
    %c0_114 = arith.constant 0 : index
    %c0_115 = arith.constant 0 : index
    %134 = vector.load %arg3[%c2_112, %c1_113, %c0_114, %c0_115] : memref<3x3x384x128xf32, #tpu.memory_space<vmem>>, vector<1x1x128x128xf32>
    %135 = vector.shape_cast %134 : vector<1x1x128x128xf32> to vector<128x128xf32>
    %cst_116 = arith.constant dense<0.000000e+00> : vector<16x128xf32>
    %136 = tpu.matmul %133, %135, %cst_116 {dimension_numbers = #tpu.dot_dimension_numbers<[1], [0], [0], [1], [0, 0, 1, 1], [], []>} : vector<16x128xf32>, vector<128x128xf32>, vector<16x128xf32> -> vector<16x128xf32>
    %137 = arith.addf %130, %136 : vector<16x128xf32>
    %c24_117 = arith.constant 24 : index
    %c0_118 = arith.constant 0 : index
    %138 = vector.load %arg7[%c24_117, %c0_118] : memref<64x256xf32, #tpu.memory_space<vmem>>, vector<16x256xf32>
    %c2_119 = arith.constant 2 : index
    %c1_120 = arith.constant 1 : index
    %c128_121 = arith.constant 128 : index
    %c0_122 = arith.constant 0 : index
    %139 = vector.load %arg3[%c2_119, %c1_120, %c128_121, %c0_122] : memref<3x3x384x128xf32, #tpu.memory_space<vmem>>, vector<1x1x256x128xf32>
    %140 = vector.shape_cast %139 : vector<1x1x256x128xf32> to vector<256x128xf32>
    %cst_123 = arith.constant dense<0.000000e+00> : vector<16x128xf32>
    %141 = tpu.matmul %138, %140, %cst_123 {dimension_numbers = #tpu.dot_dimension_numbers<[1], [0], [0], [1], [0, 0, 1, 1], [], []>} : vector<16x256xf32>, vector<256x128xf32>, vector<16x128xf32> -> vector<16x128xf32>
    %142 = arith.addf %137, %141 : vector<16x128xf32>
    %c0_i32_124 = arith.constant 0 : i32
    %c0_i32_125 = arith.constant 0 : i32
    %143 = tpu.memref_slice %arg6[%9, %c0_i32_124, %c0_i32_125] : memref<2x64x128xf32, #tpu.memory_space<vmem>> -> memref<1x64x128xf32, #tpu.memory_space<vmem>>
    %144 = tpu.memref_squeeze %143 : memref<1x64x128xf32, #tpu.memory_space<vmem>> -> memref<64x128xf32, #tpu.memory_space<vmem>>
    %c32 = arith.constant 32 : index
    %c0_126 = arith.constant 0 : index
    %145 = vector.load %144[%c32, %c0_126] : memref<64x128xf32, #tpu.memory_space<vmem>>, vector<16x128xf32>
    %c2_127 = arith.constant 2 : index
    %c2_128 = arith.constant 2 : index
    %c0_129 = arith.constant 0 : index
    %c0_130 = arith.constant 0 : index
    %146 = vector.load %arg3[%c2_127, %c2_128, %c0_129, %c0_130] : memref<3x3x384x128xf32, #tpu.memory_space<vmem>>, vector<1x1x128x128xf32>
    %147 = vector.shape_cast %146 : vector<1x1x128x128xf32> to vector<128x128xf32>
    %cst_131 = arith.constant dense<0.000000e+00> : vector<16x128xf32>
    %148 = tpu.matmul %145, %147, %cst_131 {dimension_numbers = #tpu.dot_dimension_numbers<[1], [0], [0], [1], [0, 0, 1, 1], [], []>} : vector<16x128xf32>, vector<128x128xf32>, vector<16x128xf32> -> vector<16x128xf32>
    %149 = arith.addf %142, %148 : vector<16x128xf32>
    %c32_132 = arith.constant 32 : index
    %c0_133 = arith.constant 0 : index
    %150 = vector.load %arg7[%c32_132, %c0_133] : memref<64x256xf32, #tpu.memory_space<vmem>>, vector<16x256xf32>
    %c2_134 = arith.constant 2 : index
    %c2_135 = arith.constant 2 : index
    %c128_136 = arith.constant 128 : index
    %c0_137 = arith.constant 0 : index
    %151 = vector.load %arg3[%c2_134, %c2_135, %c128_136, %c0_137] : memref<3x3x384x128xf32, #tpu.memory_space<vmem>>, vector<1x1x256x128xf32>
    %152 = vector.shape_cast %151 : vector<1x1x256x128xf32> to vector<256x128xf32>
    %cst_138 = arith.constant dense<0.000000e+00> : vector<16x128xf32>
    %153 = tpu.matmul %150, %152, %cst_138 {dimension_numbers = #tpu.dot_dimension_numbers<[1], [0], [0], [1], [0, 0, 1, 1], [], []>} : vector<16x256xf32>, vector<256x128xf32>, vector<16x128xf32> -> vector<16x128xf32>
    %154 = arith.addf %149, %153 : vector<16x128xf32>
    %c2_139 = arith.constant 2 : index
    %c0_140 = arith.constant 0 : index
    %c0_141 = arith.constant 0 : index
    %155 = vector.load %arg4[%c2_139, %c0_140, %c0_141] : memref<3x1x128xf32, #tpu.memory_space<vmem>>, vector<1x1x128xf32>
    %156 = vector.shape_cast %155 : vector<1x1x128xf32> to vector<1x128xf32>
    %157 = vector.broadcast %156 : vector<1x128xf32> to vector<16x128xf32>
    %158 = arith.addf %154, %157 : vector<16x128xf32>
    %cst_142 = arith.constant 0.000000e+00 : f32
    %159 = vector.broadcast %cst_142 : f32 to vector<16x128xf32>
    %160 = arith.maximumf %158, %159 : vector<16x128xf32>
    %161 = vector.extract_strided_slice %34 {offsets = [24, 0], sizes = [16, 1], strides = [1, 1]} : vector<64x1xi1> to vector<16x1xi1>
    %cst_143 = arith.constant 0.000000e+00 : f32
    %162 = vector.shape_cast %161 : vector<16x1xi1> to vector<16x1xi1>
    %163 = vector.broadcast %162 : vector<16x1xi1> to vector<16x128xi1>
    %164 = vector.broadcast %cst_143 : f32 to vector<16x128xf32>
    %165 = arith.select %163, %160, %164 : vector<16x128xi1>, vector<16x128xf32>
    %c0_144 = arith.constant 0 : index
    %c0_145 = arith.constant 0 : index
    %c256 = arith.constant 256 : index
    %166 = vector.load %arg5[%c0_144, %c0_145, %c256] : memref<1x16x384xf32, #tpu.memory_space<vmem>>, vector<1x16x128xf32>
    %167 = vector.shape_cast %166 : vector<1x16x128xf32> to vector<16x128xf32>
    %168 = vector.shape_cast %165 : vector<16x128xf32> to vector<1x16x128xf32>
    tpu.vector_store %arg5[%c0_144, %c0_145, %c256], %168 {strides = array<i32>} : memref<1x16x384xf32, #tpu.memory_space<vmem>>, vector<1x16x128xf32>,
    %c24_146 = arith.constant 24 : index
    %c0_147 = arith.constant 0 : index
    %169 = vector.load %arg7[%c24_146, %c0_147] : memref<64x256xf32, #tpu.memory_space<vmem>>, vector<16x256xf32>
    %c0_148 = arith.constant 0 : index
    %c0_149 = arith.constant 0 : index
    %c0_150 = arith.constant 0 : index
    %170 = vector.load %arg5[%c0_148, %c0_149, %c0_150] : memref<1x16x384xf32, #tpu.memory_space<vmem>>, vector<1x16x256xf32>
    %171 = vector.shape_cast %170 : vector<1x16x256xf32> to vector<16x256xf32>
    %172 = vector.shape_cast %169 : vector<16x256xf32> to vector<1x16x256xf32>
    tpu.vector_store %arg5[%c0_148, %c0_149, %c0_150], %172 {strides = array<i32>} : memref<1x16x384xf32, #tpu.memory_space<vmem>>, vector<1x16x256xf32>,
    return
  }
  func.func @transform_1(%arg0: i32, %arg1: i32) -> (i32, i32, i32, i32) {
    %c0_i32 = arith.constant 0 : i32
    %c0_i32_0 = arith.constant 0 : i32
    %c0_i32_1 = arith.constant 0 : i32
    %c0_i32_2 = arith.constant 0 : i32
    %c0_i32_3 = arith.constant 0 : i32
    return %c0_i32, %c0_i32_0, %c0_i32_1, %c0_i32_2 : i32, i32, i32, i32
  }
  func.func @transform_2(%arg0: i32, %arg1: i32) -> (i32, i32, i32) {
    %c0_i32 = arith.constant 0 : i32
    %c0_i32_0 = arith.constant 0 : i32
    %c0_i32_1 = arith.constant 0 : i32
    %c0_i32_2 = arith.constant 0 : i32
    return %c0_i32, %c0_i32_0, %c0_i32_1 : i32, i32, i32
  }
  func.func @transform_3(%arg0: i32, %arg1: i32) -> (i32, i32, i32) {
    %c0_i32 = arith.constant 0 : i32
    %c0_i32_0 = arith.constant 0 : i32
    return %arg0, %arg1, %c0_i32 : i32, i32, i32
  }
}

</mosaic_0001>

<bundles_post_ra>
// kernel: dense_block_forward.1
= control target key start
LH: loop header
LB: loop body
LE: loop exit
PB: predicated region body
PF: predicated region fallthrough
CT: control target
= control target key end

     0   :  { %s3983_s12 = smov 0   ;;  %s3985_s13 = smov 0   ;;  %s5123_s0 = inlined_call_operand.vmem [shape: f32[2,96,128], index: 0, kind: input, shape index: {}]   ;;  %s5124_s1 = inlined_call_operand.vmem [shape: f32[3,3,384,128], index: 1, kind: input, shape index: {}]   ;;  %s5125_s2 = inlined_call_operand.vmem [shape: f32[3,1,128], index: 2, kind: input, shape index: {}]   ;;  %s5126_s3 = inlined_call_operand.vmem [shape: f32[2,48,384], index: 3, kind: output, shape index: {}]  }
   0x1   :  { %s3987_s14 = smov 0   ;;  %s3989_s15 = smov 0  }
   0x2   :  { %s3991_s16 = smov 0  }
   0x3 LB: > { %s22_s17 = sadd.s32 1, %s3953_s14  ;;  %s25_s18 = sadd.s32 1, %s3957_s15  ;;  %s3961_s16 = sphi %s3991_s16, %s13_s16   ;;  %s3957_s15 = sphi %s3989_s15, %s5138_s15   ;;  %s3953_s14 = sphi %s3987_s14, %s5137_s14   ;;  %s3949_s13 = sphi %s3985_s13, %s5136_s13   ;;  %s3945_s12 = sphi %s3983_s12, %s5135_s12  }
   0x4   : > { %p23_p0 = scmp.ge.s32.totalorder %s22_s17, 3  ;;  %p2226_p1 = scmp.ge.s32.totalorder %s3961_s16, 1 }
   0x5   : > { %p117_p2 = scmp.lt.s32.totalorder %s3961_s16, 7 }
   0x6   : > { %s5140_s17 = smov (%p23_p0, %s22_s17), 0  ;;  %s5142_s18 = smov (!%p23_p0, %s25_s18), %s3957_s15 }
   0x7   : > { %p118_p3 = pnand %p2226_p1, %p117_p2  ;;  %p27_p4 = scmp.ge.s32.totalorder %s5142_s18, 2 }
   0x8   : > { %s2227_s19 = sshll.u32 (!%p118_p3), %s3945_s12, 1  ;;  %p140_p5 = scmp.lt.s32.totalorder (!%p118_p3), %s3949_s13, 1 }
   0x9   : > { %s5144_s18 = smov (%p27_p4, %s5142_s18), 0  ;;  %121 = sbr.rel (%p118_p3) target bundleno = 1105 (0x451), region = 28 }
   0xa   : > { %p142_p6 = scmp.lt.s32.totalorder (!%p118_p3), %s2227_s19, 5  ;;  %s151_s22 = ssub.s32 (!%p118_p3), 0, %s3945_s12 }
   0xb   : > { %s2229_s24 = smin.u32 (!%p118_p3), %s3945_s12, %s151_s22  ;;  %p150_p7 = scmp.lt.s32.totalorder (!%p118_p3), %s3945_s12, 0 }
   0xc   : > { %s153_s25 = sand.u32 (!%p118_p3), 1, %s2229_s24   ;;  %p2232_p9 = scmp.ne.s32.totalorder (!%p118_p3), %s3945_s12, 0 }
   0xd   : > { %s154_s27 = ssub.s32 (!%p118_p3), 0, %s153_s25 }
  0x10   : > { %s141_s20 = scalar_select %p140_p5, %s3949_s13, 1 }
  0x11   : > { %s5146_s19 = smov (!%p142_p6, %s2227_s19), 5  ;;  %s5148_s27 = smov (!%p150_p7, %s154_s27), %s153_s25 }
  0x12   : > { %s3866_s21 = smul.u32 18, %s141_s20  ;;  %p2231_p8 = scmp.lt.s32.totalorder %s5148_s27, 0 }
  0x13   : > { %s3865_s23 = smul.u32 3, %s5146_s19  ;;  %s160_s5 = sadd.s32 2, %s5148_s27 }
  0x14   : > { %s5150_s5 = smov (!%p2231_p8, %s160_s5), %s5148_s27  ;;  %165 = sbr.rel (%p2232_p9) target bundleno = 30 (0x1e), region = 32 }
  0x15   : > { %s146_s26 = sadd.s32 %s3866_s21, %s3865_s23  ;;  %s166_s6 = smul.u32 (!%p2232_p9), 96, %s3949_s13 }
  0x16   : > { %s2228_s28 = sshll.u32 %s146_s26, 3  ;;  %s2233_s7 = sshll.u32 (!%p2232_p9), %s5150_s5, 6 }
  0x17   : > { %s4026_s4 = scalar_lea.vmem %s5126_s3, %s2228_s28  ;;  %s167_s10 = scalar_lea.vmem (!%p2232_p9), %s5123_s0, %s166_s6 }
  0x18   : > { %v203_v0 = vld [vmem:[%s167_s10] sm:$0xff] (!%p2232_p9)  ;;  %v205_v1 = vld [vmem:[%s167_s10 + $0x8] sm:$0xff] (!%p2232_p9)  ;;  %v207_v2 = vld [vmem:[%s167_s10 + $0x10] sm:$0xff] (!%p2232_p9)  ;;  %s169_s11 = scalar_lea.vmem (!%p2232_p9), [#allocation2], %s2233_s7  ;;  %s170_s19 = scalar_lea.sflag (!%p2232_p9), [#allocation4], %s5150_s5 }
  0x19   : > { %204 = vst [vmem:[%s169_s11] sm:$0xff] (!%p2232_p9), %v203_v0  ;;  %206 = vst [vmem:[%s169_s11 + $0x8] sm:$0xff] (!%p2232_p9), %v205_v1  ;;  %v209_v3 = vld [vmem:[%s167_s10 + $0x18] sm:$0xff] (!%p2232_p9)  ;;  %v211_v4 = vld [vmem:[%s167_s10 + $0x20] sm:$0xff] (!%p2232_p9) }
  0x1a   : > { %208 = vst [vmem:[%s169_s11 + $0x10] sm:$0xff] (!%p2232_p9), %v207_v2  ;;  %v213_v5 = vld [vmem:[%s167_s10 + $0x28] sm:$0xff] (!%p2232_p9)  ;;  %210 = vst [vmem:[%s169_s11 + $0x18] sm:$0xff] (!%p2232_p9), %v209_v3  ;;  %v215_v6 = vld [vmem:[%s167_s10 + $0x30] sm:$0xff] (!%p2232_p9) }
  0x1b   : > { %212 = vst [vmem:[%s169_s11 + $0x20] sm:$0xff] %v211_v4  ;;  %214 = vst [vmem:[%s169_s11 + $0x28] sm:$0xff] %v213_v5  ;;  %v217_v7 = vld [vmem:[%s167_s10 + $0x38] sm:$0xff] }
  0x1c   : > { %216 = vst [vmem:[%s169_s11 + $0x30] sm:$0xff] %v215_v6  ;;  %218 = vst [vmem:[%s169_s11 + $0x38] sm:$0xff] %v217_v7 }
  0x1d   : > { %226 = vsyncadd %s170_s19, 1024 }
  0x1e PF: > { %s227_s20 = sadd.s32 1, %s3945_s12 }
  0x1f   : > { %p2234_p10 = scmp.ge.s32.totalorder %s227_s20, 3 }
  0x20   : > { %s232_s21 = ssub.s32 (!%p2234_p10), 1, %s5150_s5  ;;  %s2235_s22 = sshll.u32 (!%p2234_p10), %s3945_s12, 4 }
  0x21   : > { %231 = sbr.rel (%p2234_p10) target bundleno = 44 (0x2c), region = 70  ;;  %s2236_s24 = sshll.u32 (!%p2234_p10), %s232_s21, 6 }
  0x22   : > { %s2161_s23 = smul.u32 (!%p2234_p10), 96, %s3949_s13  ;;  %s238_s29 = scalar_lea.vmem (!%p2234_p10), [#allocation2], %s2236_s24 }
  0x23   : > { %s239_s13 = scalar_lea.sflag (!%p2234_p10), [#allocation4], %s232_s21 }
  0x24   : > { %s2162_s25 = sadd.s32 (!%p2234_p10), %s2235_s22, %s2161_s23 }
  0x25   : > { %s2163_s28 = scalar_lea.vmem (!%p2234_p10), %s5123_s0, %s2162_s25 }
  0x26   : > { %v2237_v8 = vld [vmem:[%s2163_s28 + $0x10] sm:$0xff] (!%p2234_p10)  ;;  %v2238_v9 = vld [vmem:[%s2163_s28 + $0x18] sm:$0xff] (!%p2234_p10)  ;;  %v2239_v10 = vld [vmem:[%s2163_s28 + $0x20] sm:$0xff] (!%p2234_p10) }
  0x27   : > { %273 = vst [vmem:[%s238_s29] sm:$0xff] (!%p2234_p10), %v2237_v8  ;;  %275 = vst [vmem:[%s238_s29 + $0x8] sm:$0xff] (!%p2234_p10), %v2238_v9  ;;  %v2240_v11 = vld [vmem:[%s2163_s28 + $0x28] sm:$0xff] (!%p2234_p10)  ;;  %v2241_v12 = vld [vmem:[%s2163_s28 + $0x30] sm:$0xff] (!%p2234_p10) }
  0x28   : > { %277 = vst [vmem:[%s238_s29 + $0x10] sm:$0xff] %v2239_v10  ;;  %v2242_v13 = vld [vmem:[%s2163_s28 + $0x38] sm:$0xff]  ;;  %279 = vst [vmem:[%s238_s29 + $0x18] sm:$0xff] %v2240_v11  ;;  %v2243_v14 = vld [vmem:[%s2163_s28 + $0x40] sm:$0xff] }
  0x29   : > { %281 = vst [vmem:[%s238_s29 + $0x20] sm:$0xff] %v2241_v12  ;;  %283 = vst [vmem:[%s238_s29 + $0x28] sm:$0xff] %v2242_v13  ;;  %v2244_v15 = vld [vmem:[%s2163_s28 + $0x48] sm:$0xff] }
  0x2a   : > { %285 = vst [vmem:[%s238_s29 + $0x30] sm:$0xff] %v2243_v14  ;;  %287 = vst [vmem:[%s238_s29 + $0x38] sm:$0xff] %v2244_v15 }
  0x2b   : > { %295 = vsyncadd %s239_s13, 1024 }
  0x2c PF: > { %s2246_s30 = sshll.u32 %s3945_s12, 4  ;;  %s2247_s6 = sshll.u32 %s5150_s5, 6 }
  0x2d   : > { %s4046_s7 = scalar_lea.vmem [#allocation2], %s2247_s6  ;;  %s299_s8 = scalar_lea.sflag [#allocation4], %s5150_s5 }
  0x2e   : > { %3941 = dma.done.wait %s299_s8, 1024 }
  0x2f   : > { %3942 = vsyncadd %s299_s8, 4294966272  ;;  %v2254_v16 = vld [vmem:[%s5124_s1 + $0x180] sm:$0xff]  ;;  %v2255_v17 = vld [vmem:[%s5124_s1 + $0x188] sm:$0xff] }
  0x30   : > { %v2256_v18 = vld [vmem:[%s5124_s1 + $0x190] sm:$0xff]  ;;  %v3345_v19 = vpack.c.bf16 %v2255_v17, %v2254_v16  ;;  %v2257_v20 = vld [vmem:[%s5124_s1 + $0x198] sm:$0xff]  ;;  %v2258_v22 = vld [vmem:[%s5124_s1 + $0x1a0] sm:$0xff] }
  0x31   : > { %v3349_v21 = vpack.c.bf16 %v2257_v20, %v2256_v18  ;;  %v2259_v23 = vld [vmem:[%s5124_s1 + $0x1a8] sm:$0xff]  ;;  %v2260_v26 = vld [vmem:[%s5124_s1 + $0x1b0] sm:$0xff]  ;;  %v2261_v27 = vld [vmem:[%s5124_s1 + $0x1b8] sm:$0xff] }
  0x32   : > { %3346 = vmatprep.subr.bf16.mxu0 %v3345_v19  ;;  %v3353_v24 = vpack.c.bf16 %v2259_v23, %v2258_v22  ;;  %v364_v25 = vld [vmem:[%s4046_s7 + $0x8] sm:$0xff]  ;;  %v3357_v28 = vpack.c.bf16 %v2261_v27, %v2260_v26  ;;  %v2262_v29 = vld [vmem:[%s5124_s1 + $0x1c0] sm:$0xff]  ;;  %v2264_v32 = vld [vmem:[%s5124_s1 + $0x1d0] sm:$0xff] }
  0x33   : > { %3348 = vmatpush3.bf16.msra.mxu0 %v3345_v19  ;;  %2921 = vmatprep.mubr.f32.mxu0 %v364_v25  ;;  %v2263_v30 = vld [vmem:[%s5124_s1 + $0x1c8] sm:$0xff]  ;;  %v2265_v33 = vld [vmem:[%s5124_s1 + $0x1d8] sm:$0xff]  ;;  %v2266_v35 = vld [vmem:[%s5124_s1 + $0x1e0] sm:$0xff] }
  0x34   : > { %3350 = vmatprep.subr.bf16.mxu0 %v3349_v21  ;;  %v3361_v31 = vpack.c.bf16 %v2263_v30, %v2262_v29  ;;  %v3365_v34 = vpack.c.bf16 %v2265_v33, %v2264_v32  ;;  %v2267_v36 = vld [vmem:[%s5124_s1 + $0x1e8] sm:$0xff]  ;;  %v2268_v38 = vld [vmem:[%s5124_s1 + $0x1f0] sm:$0xff]  ;;  %v2269_v39 = vld [vmem:[%s5124_s1 + $0x1f8] sm:$0xff] }
  0x35   : > { %v3369_v37 = vpack.c.bf16 %v2267_v36, %v2266_v35  ;;  %v2303_v40 = vld [vmem:[%s5124_s1 + $0x500] sm:$0xff]  ;;  %v2304_v41 = vld [vmem:[%s5124_s1 + $0x508] sm:$0xff]  ;;  %v2305_v42 = vld [vmem:[%s5124_s1 + $0x510] sm:$0xff]  ;;  %v3373_v48 = vpack.c.bf16 %v2269_v39, %v2268_v38 }
  0x36   : > { %v3441_v43 = vpack.c.bf16 %v2304_v41, %v2303_v40  ;;  %v2306_v44 = vld [vmem:[%s5124_s1 + $0x518] sm:$0xff]  ;;  %v2307_v46 = vld [vmem:[%s5124_s1 + $0x520] sm:$0xff]  ;;  %v2308_v47 = vld [vmem:[%s5124_s1 + $0x528] sm:$0xff] }
  0x37   : > { %3352 = vmatpush3.bf16.msra.mxu0 %v3349_v21  ;;  %v3445_v45 = vpack.c.bf16 %v2306_v44, %v2305_v42  ;;  %v348_v49 = vld [vmem:[%s5124_s1] sm:$0xff]  ;;  %v349_v50 = vld [vmem:[%s5124_s1 + $0x8] sm:$0xff]  ;;  %v3449_v51 = vpack.c.bf16 %v2308_v47, %v2307_v46  ;;  %v350_v53 = vld [vmem:[%s5124_s1 + $0x10] sm:$0xff] }
  0x38   : > { %3354 = vmatprep.subr.bf16.mxu0 %v3353_v24  ;;  %3442 = vmatprep.subr.bf16.mxu1 %v3441_v43  ;;  %v3377_v52 = vpack.c.bf16 %v349_v50, %v348_v49  ;;  %v351_v54 = vld [vmem:[%s5124_s1 + $0x18] sm:$0xff]  ;;  %v4129_v55 = vld [vmem:[%s4046_s7 + $0x10] sm:$0xff]  ;;  %v352_v58 = vld [vmem:[%s5124_s1 + $0x20] sm:$0xff] }
  0x39   : > { %3444 = vmatpush3.bf16.msra.mxu1 %v3441_v43  ;;  %v3381_v56 = vpack.c.bf16 %v351_v54, %v350_v53  ;;  %v4132_v57 = vld [vmem:[%s4046_s7 + $0x18] sm:$0xff]  ;;  %v353_v59 = vld [vmem:[%s5124_s1 + $0x28] sm:$0xff]  ;;  %v4143_v60 = vld [vmem:[%s4046_s7 + $0x20] sm:$0xff] }
  0x3a   : > { %3446 = vmatprep.subr.bf16.mxu1 %v3445_v45  ;;  %v3385_v61 = vpack.c.bf16 %v353_v59, %v352_v58  ;;  %v4146_v62 = vld [vmem:[%s4046_s7 + $0x28] sm:$0xff]  ;;  %v354_v63 = vld [vmem:[%s5124_s1 + $0x30] sm:$0xff]  ;;  %v355_v0 = vld [vmem:[%s5124_s1 + $0x38] sm:$0xff] }
  0x3b   : > { %3356 = vmatpush3.bf16.msra.mxu0 %v3353_v24  ;;  %v369_v1 = vld [vmem:[%s4046_s7 + $0x30] sm:$0xff]  ;;  %v3389_v2 = vpack.c.bf16 %v355_v0, %v354_v63  ;;  %v342_v3 = vld [vmem:[%s4046_s7 + $0x6] sm:$0xff]  ;;  %v359_v8 = vld [vmem:[%s5124_s1 + $0x58] sm:$0xff] }
  0x3c   : > { %3358 = vmatprep.subr.bf16.mxu0 %v3357_v28  ;;  %v356_v4 = vld [vmem:[%s5124_s1 + $0x40] sm:$0xff]  ;;  %v357_v5 = vld [vmem:[%s5124_s1 + $0x48] sm:$0xff]  ;;  %v358_v7 = vld [vmem:[%s5124_s1 + $0x50] sm:$0xff] }
  0x3d   : > { %3448 = vmatpush3.bf16.msra.mxu1 %v3445_v45  ;;  %v3393_v6 = vpack.c.bf16 %v357_v5, %v356_v4  ;;  %v3397_v9 = vpack.c.bf16 %v359_v8, %v358_v7  ;;  %v360_v10 = vld [vmem:[%s5124_s1 + $0x60] sm:$0xff]  ;;  %v361_v11 = vld [vmem:[%s5124_s1 + $0x68] sm:$0xff]  ;;  %v362_v13 = vld [vmem:[%s5124_s1 + $0x70] sm:$0xff] }
  0x3e   : > { %3450 = vmatprep.subr.bf16.mxu1 %v3449_v51  ;;  %v3401_v12 = vpack.c.bf16 %v361_v11, %v360_v10  ;;  %v363_v14 = vld [vmem:[%s5124_s1 + $0x78] sm:$0xff]  ;;  %v2270_v16 = vld [vmem:[%s5124_s1 + $0x300] sm:$0xff]  ;;  %v2271_v17 = vld [vmem:[%s5124_s1 + $0x308] sm:$0xff] }
  0x3f   : > { %3360 = vmatpush3.bf16.msra.mxu0 %v3357_v28  ;;  %v3405_v15 = vpack.c.bf16 %v363_v14, %v362_v13  ;;  %v3409_v18 = vpack.c.bf16 %v2271_v17, %v2270_v16  ;;  %v2272_v19 = vld [vmem:[%s5124_s1 + $0x310] sm:$0xff]  ;;  %v2273_v20 = vld [vmem:[%s5124_s1 + $0x318] sm:$0xff]  ;;  %v2274_v24 = vld [vmem:[%s5124_s1 + $0x320] sm:$0xff] }
  0x40   : > { %3362 = vmatprep.subr.bf16.mxu0 %v3361_v31  ;;  %v343_v21 = vld [vmem:[%s4046_s7 + $0xe] sm:$0xff]  ;;  %v3413_v22 = vpack.c.bf16 %v2273_v20, %v2272_v19  ;;  %v344_v23 = vld [vmem:[%s4046_s7 + $0x16] sm:$0xff]  ;;  %v345_v26 = vld [vmem:[%s4046_s7 + $0x1e] sm:$0xff] }
  0x41   : > { %3452 = vmatpush3.bf16.msra.mxu1 %v3449_v51  ;;  %v2275_v25 = vld [vmem:[%s5124_s1 + $0x328] sm:$0xff]  ;;  %v2276_v29 = vld [vmem:[%s5124_s1 + $0x330] sm:$0xff]  ;;  %v2277_v30 = vld [vmem:[%s5124_s1 + $0x338] sm:$0xff] }
  0x42   : > { %v3417_v27 = vpack.c.bf16 %v2275_v25, %v2274_v24  ;;  %v346_v28 = vld [vmem:[%s4046_s7 + $0x26] sm:$0xff]  ;;  %v3421_v32 = vpack.c.bf16 %v2277_v30, %v2276_v29  ;;  %v2281_v38 = vld [vmem:[%s5124_s1 + $0x358] sm:$0xff]  ;;  %v2284_v43 = vld [vmem:[%s5124_s1 + $0x370] sm:$0xff] }
  0x43   : > { %3364 = vmatpush3.bf16.msra.mxu0 %v3361_v31  ;;  %v347_v31 = vld [vmem:[%s4046_s7 + $0x2e] sm:$0xff]  ;;  %v2282_v40 = vld [vmem:[%s5124_s1 + $0x360] sm:$0xff]  ;;  %v2285_v44 = vld [vmem:[%s5124_s1 + $0x378] sm:$0xff] }
  0x44   : > { %3366 = vmatprep.subr.bf16.mxu0 %v3365_v34  ;;  %v577_v33 = vld [vmem:[%s4046_s7 + $0xa] sm:$0xff]  ;;  %v3437_v45 = vpack.c.bf16 %v2285_v44, %v2284_v43  ;;  %v578_v46 = vld [vmem:[%s4046_s7 + $0x12] sm:$0xff]  ;;  %v579_v47 = vld [vmem:[%s4046_s7 + $0x1a] sm:$0xff] }
  0x45   : > { %v2279_v35 = vld [vmem:[%s5124_s1 + $0x348] sm:$0xff]  ;;  %v582_v50 = vld [vmem:[%s4046_s7 + $0x32] sm:$0xff]  ;;  %v2311_v54 = vld [vmem:[%s5124_s1 + $0x540] sm:$0xff] }
  0x46   : > { %v2283_v41 = vld [vmem:[%s5124_s1 + $0x368] sm:$0xff]  ;;  %v2309_v51 = vld [vmem:[%s5124_s1 + $0x530] sm:$0xff]  ;;  %v2315_v0 = vld [vmem:[%s5124_s1 + $0x560] sm:$0xff] }
  0x47   : > { %3368 = vmatpush3.bf16.msra.mxu0 %v3365_v34  ;;  %v2278_v34 = vld [vmem:[%s5124_s1 + $0x340] sm:$0xff]  ;;  %v3433_v42 = vpack.c.bf16 %v2283_v41, %v2282_v40  ;;  %v581_v49 = vld [vmem:[%s4046_s7 + $0x2a] sm:$0xff]  ;;  %v2318_v4 = vld [vmem:[%s5124_s1 + $0x578] sm:$0xff] }
  0x48   : > { %3370 = vmatprep.subr.bf16.mxu0 %v3369_v37  ;;  %v3425_v36 = vpack.c.bf16 %v2279_v35, %v2278_v34  ;;  %v2313_v59 = vld [vmem:[%s5124_s1 + $0x550] sm:$0xff]  ;;  %v2288_v7 = vld [vmem:[%s5124_s1 + $0x488] sm:$0xff]  ;;  %v2286_v24 = vld [vmem:[%s5125_s2] ss:$0 sm:$0xff] }
  0x4b   : > { %3372 = vmatpush3.bf16.msra.mxu0 %v3369_v37  ;;  %v2280_v37 = vld [vmem:[%s5124_s1 + $0x350] sm:$0xff] }
  0x4c   : > { %3374 = vmatprep.subr.bf16.mxu0 %v3373_v48  ;;  %v3429_v39 = vpack.c.bf16 %v2281_v38, %v2280_v37 }
  0x4f   : > { %3376 = vmatpush3.bf16.msra.mxu0 %v3373_v48  ;;  %v580_v48 = vld [vmem:[%s4046_s7 + $0x22] sm:$0xff] }
  0x50   : > { %3378 = vmatprep.subr.bf16.mxu0 %v3377_v52 }
  0x52   : > { %2922 = vmatmul.mubr.f32.vlgmr.msra.gmra.mrb[0].mxu0 %v4129_v55 }
  0x53   : > { %3380 = vmatpush3.bf16.msra.mxu0 %v3377_v52  ;;  %2924 = vmatprep.mubr.f32.mxu0 %v4132_v57  ;;  %v2310_v52 = vld [vmem:[%s5124_s1 + $0x538] sm:$0xff] }
  0x54   : > { %3382 = vmatprep.subr.bf16.mxu0 %v3381_v56  ;;  %v3453_v53 = vpack.c.bf16 %v2310_v52, %v2309_v51 }
  0x56   : > { %2925 = vmatmul.mubr.f32.gmra.mrb[2].mxu0 %v4143_v60  ;;  %3454 = vmatprep.subr.bf16.mxu1 %v3453_v53 }
  0x57   : > { %3384 = vmatpush3.bf16.msra.mxu0 %v3381_v56  ;;  %2927 = vmatprep.mubr.f32.mxu0 %v4146_v62  ;;  %v2312_v56 = vld [vmem:[%s5124_s1 + $0x548] sm:$0xff] }
  0x58   : > { %3386 = vmatprep.subr.bf16.mxu0 %v3385_v61  ;;  %3456 = vmatpush3.bf16.msra.mxu1 %v3453_v53  ;;  %v3457_v58 = vpack.c.bf16 %v2312_v56, %v2311_v54  ;;  %v2398_v56 = vld [vmem:[%s5124_s1 + $0x968] sm:$0xff] }
  0x5a   : > { %2928 = vmatmul.mubr.f32.gmra.mrb[4].mxu0 %v369_v1  ;;  %3458 = vmatprep.subr.bf16.mxu1 %v3457_v58  ;;  %v2316_v1 = vld [vmem:[%s5124_s1 + $0x568] sm:$0xff] }
  0x5b   : > { %3388 = vmatpush3.bf16.msra.mxu0 %v3385_v61  ;;  %2962 = vmatprep.mubr.f32.mxu0 %v342_v3  ;;  %v2314_v61 = vld [vmem:[%s5124_s1 + $0x558] sm:$0xff]  ;;  %v2317_v3 = vld [vmem:[%s5124_s1 + $0x570] sm:$0xff] }
  0x5c   : > { %3390 = vmatprep.subr.bf16.mxu0 %v3389_v2  ;;  %3460 = vmatpush3.bf16.msra.mxu1 %v3457_v58  ;;  %v3461_v63 = vpack.c.bf16 %v2314_v61, %v2313_v59  ;;  %v3469_v5 = vpack.c.bf16 %v2318_v4, %v2317_v3  ;;  %v2289_v61 = vld [vmem:[%s5124_s1 + $0x490] sm:$0xff]  ;;  %v2290_v3 = vld [vmem:[%s5124_s1 + $0x498] sm:$0xff] }
  0x5e   : > { %3462 = vmatprep.subr.bf16.mxu1 %v3461_v63 }
  0x5f   : > { %3392 = vmatpush3.bf16.msra.mxu0 %v3389_v2  ;;  %v3465_v2 = vpack.c.bf16 %v2316_v1, %v2315_v0 }
  0x60   : > { %3394 = vmatprep.subr.bf16.mxu0 %v3393_v6  ;;  %3464 = vmatpush3.bf16.msra.mxu1 %v3461_v63 }
  0x61   : > { %3466 = vmatprep.subr.bf16.mxu1 %v3465_v2 }
  0x63   : > { %3396 = vmatpush3.bf16.msra.mxu0 %v3393_v6  ;;  %v2287_v6 = vld [vmem:[%s5124_s1 + $0x480] sm:$0xff] }
  0x64   : > { %3398 = vmatprep.subr.bf16.mxu0 %v3397_v9  ;;  %3468 = vmatpush3.bf16.msra.mxu1 %v3465_v2  ;;  %v4277_v8 = vpack.c.bf16 %v2288_v7, %v2287_v6 }
  0x65   : > { %3470 = vmatprep.subr.bf16.mxu1 %v3469_v5 }
  0x67   : > { %3400 = vmatpush3.bf16.msra.mxu0 %v3397_v9  ;;  %v303_v9 = vlaneseq }
  0x68   : > { %3402 = vmatprep.subr.bf16.mxu0 %v3401_v12  ;;  %3472 = vmatpush3.bf16.msra.mxu1 %v3469_v5 }
  0x69   : > { %3474 = vmatprep.subr.bf16.mxu1 %v4277_v8  ;;  %v304_v10 = vshrl.u32 %v303_v9, 7 }
  0x6b   : > { %3404 = vmatpush3.bf16.msra.mxu0 %v3401_v12  ;;  %v306_v11 = vadd.s32 16, %v304_v10  ;;  %v311_v12 = vstv %s2246_s30  ;;  %v305_v13 = vadd.s32 8, %v304_v10  ;;  %v307_v17 = vadd.s32 24, %v304_v10 }
  0x6c   : > { %3406 = vmatprep.subr.bf16.mxu0 %v3405_v15  ;;  %v310_v20 = vadd.s32 48, %v304_v10 }
  0x6d   : > { %v313_v14 = vadd.s32 %v311_v12, %v306_v11  ;;  %v312_v16 = vadd.s32 %v311_v12, %v305_v13 }
  0x6f   : > { %3408 = vmatpush3.bf16.msra.mxu0 %v3405_v15  ;;  %v308_v15 = vadd.s32 32, %v304_v10 }
  0x70   : > { %3410 = vmatprep.subr.bf16.mxu0 %v3409_v18 }
  0x71   : > { %v315_v19 = vadd.s32 %v311_v12, %v308_v15  ;;  %v2291_v15 = vld [vmem:[%s5124_s1 + $0x4a0] sm:$0xff] }
  0x72   : > { %2963 = vmatmul.mubr.f32.vlgmr.msra.gmra.mrb[0].mxu0 %v343_v21  ;;  %v2248_v21 = vadd.s32 4294967272, %v312_v16  ;;  %v2292_v16 = vld [vmem:[%s5124_s1 + $0x4a8] sm:$0xff] }
  0x73   : > { %3412 = vmatpush3.bf16.msra.mxu0 %v3409_v18  ;;  %2965 = vmatprep.mubr.f32.mxu0 %v344_v23  ;;  %v2249_v18 = vadd.s32 4294967272, %v313_v14  ;;  %v309_v23 = vadd.s32 40, %v304_v10  ;;  %v2251_v25 = vadd.s32 4294967272, %v315_v19 }
  0x74   : > { %3414 = vmatprep.subr.bf16.mxu0 %v3413_v22  ;;  %vm324_vm2 = vcmp.ge.s32.totalorder %v2248_v21, 0  ;;  %vm330_vm3 = vcmp.lt.s32.totalorder %v2248_v21, 40  ;;  %v2294_v21 = vld [vmem:[%s5124_s1 + $0x4b8] sm:$0xff] }
  0x75   : > { %vm325_vm0 = vcmp.ge.s32.totalorder %v2249_v18, 0  ;;  %vm331_vm1 = vcmp.lt.s32.totalorder %v2249_v18, 40  ;;  %v316_v29 = vadd.s32 %v311_v12, %v309_v23  ;;  %vm336_vm5 = vmand %vm324_vm2, %vm330_vm3  ;;  %vm327_vm6 = vcmp.ge.s32.totalorder %v2251_v25, 0  ;;  %v744_v23 = vld [vmem:[%s4046_s7 + $0xc] sm:$0xff] }
  0x76   : > { %2966 = vmatmul.mubr.f32.gmra.mrb[2].mxu0 %v345_v26  ;;  %v317_v26 = vadd.s32 %v311_v12, %v310_v20  ;;  %vm4285_vm4 = vmand %vm325_vm0, %vm331_vm1  ;;  %vm333_vm7 = vcmp.lt.s32.totalorder %v2251_v25, 40  ;;  %vm791_vm2 = vcmask 1043456   ;;  %v3481_v18 = vpack.c.bf16 %v2292_v16, %v2291_v15  ;;  %v2293_v20 = vld [vmem:[%s5124_s1 + $0x4b0] sm:$0xff]  ;;  %v2295_v25 = vld [vmem:[%s5124_s1 + $0x4c0] sm:$0xff] }
  0x77   : > { %3416 = vmatpush3.bf16.msra.mxu0 %v3413_v22  ;;  %2968 = vmatprep.mubr.f32.mxu0 %v346_v28  ;;  %v314_v22 = vadd.s32 %v311_v12, %v307_v17  ;;  %v2252_v38 = vadd.s32 4294967272, %v316_v29  ;;  %vm4294_vm10 = vmand %vm327_vm6, %vm333_vm7  ;;  %v3477_v12 = vpack.c.bf16 %v2290_v3, %v2289_v61  ;;  %v2298_v29 = vld [vmem:[%s5124_s1 + $0x4d8] sm:$0xff]  ;;  %v2327_v15 = vld [vmem:[%s5124_s1 + $0x640] sm:$0xff] }
  0x78   : > { %3418 = vmatprep.subr.bf16.mxu0 %v3417_v27  ;;  %v2253_v35 = vadd.s32 4294967272, %v317_v26  ;;  %v2296_v26 = vld [vmem:[%s5124_s1 + $0x4c8] sm:$0xff]  ;;  %v2326_v61 = vld [vmem:[%s5124_s1 + $0x638] sm:$0xff] }
  0x79   : > { %v2250_v28 = vadd.s32 4294967272, %v314_v22  ;;  %vm328_vm14 = vcmp.ge.s32.totalorder %v2252_v38, 0  ;;  %vm334_vm15 = vcmp.lt.s32.totalorder %v2252_v38, 40  ;;  %v2328_v16 = vld [vmem:[%s5124_s1 + $0x648] sm:$0xff] }
  0x7a   : > { %2969 = vmatmul.mubr.f32.gmra.mrb[4].mxu0 %v347_v31  ;;  %vm329_vm12 = vcmp.ge.s32.totalorder %v2253_v35, 0  ;;  %vm335_vm13 = vcmp.lt.s32.totalorder %v2253_v35, 40  ;;  %vm4314_vm1 = vmand %vm328_vm14, %vm334_vm15 }
  0x7b   : > { %3420 = vmatpush3.bf16.msra.mxu0 %v3417_v27  ;;  %3003 = vmatprep.mubr.f32.mxu0 %v577_v33  ;;  %vm326_vm8 = vcmp.ge.s32.totalorder %v2250_v28, 0  ;;  %vm332_vm9 = vcmp.lt.s32.totalorder %v2250_v28, 40  ;;  %vm341_vm0 = vmand %vm329_vm12, %vm335_vm13  ;;  %v2297_v28 = vld [vmem:[%s5124_s1 + $0x4d0] sm:$0xff] }
  0x7c   : > { %3422 = vmatprep.subr.bf16.mxu0 %v3421_v32  ;;  %vm4300_vm11 = vmand %vm326_vm8, %vm332_vm9 }
  0x7f   : > { %3424 = vmatpush3.bf16.msra.mxu0 %v3421_v32  ;;  %v2391_v32 = vld [vmem:[%s5124_s1 + $0x930] sm:$0xff] }
  0x80   : > { %3426 = vmatprep.subr.bf16.mxu0 %v3425_v36 }
  0x83   : > { %3428 = vmatpush3.bf16.msra.mxu0 %v3425_v36 }
  0x84   : > { %3430 = vmatprep.subr.bf16.mxu0 %v3429_v39 }
  0x87   : > { %3432 = vmatpush3.bf16.msra.mxu0 %v3429_v39 }
  0x88   : > { %3434 = vmatprep.subr.bf16.mxu0 %v3433_v42 }
  0x8b   : > { %3436 = vmatpush3.bf16.msra.mxu0 %v3433_v42 }
  0x8c   : > { %3438 = vmatprep.subr.bf16.mxu0 %v3437_v45 }
  0x8f   : > { %3440 = vmatpush3.bf16.msra.mxu0 %v3437_v45 }
  0x92   : > { %3004 = vmatmul.mubr.f32.vlgmr.msra.gmra.mrb[0].mxu0 %v578_v46 }
  0x93   : > { %3006 = vmatprep.mubr.f32.mxu0 %v579_v47 }
  0x96   : > { %3007 = vmatmul.mubr.f32.gmra.mrb[2].mxu0 %v580_v48 }
  0x97   : > { %3009 = vmatprep.mubr.f32.mxu0 %v581_v49 }
  0x9a   : > { %3010 = vmatmul.mubr.f32.gmra.mrb[4].mxu0 %v582_v50 }
 0x165   : > { %v3005_v27 = vpop.f32.mrb[0].mxu0 }
 0x166   : > { %v709_v30 = vadd.f32 %v3005_v27, %v2286_v24  ;;  %v666_v31 = vpop.f32.mrb[1].mxu0  ;;  %v3489_v27 = vpack.c.bf16 %v2296_v26, %v2295_v25  ;;  %v2329_v25 = vld [vmem:[%s5124_s1 + $0x650] sm:$0xff]  ;;  %v2330_v26 = vld [vmem:[%s5124_s1 + $0x658] sm:$0xff] }
 0x167   : > { %v708_v33 = vadd.f32 %v2286_v24, %v666_v31  ;;  %v2299_v31 = vld [vmem:[%s5124_s1 + $0x4e0] sm:$0xff] }
 0x168   : > { %v4289_v34 = vmax.f32 %v709_v30, 0.0  ;;  %v3493_v30 = vpack.c.bf16 %v2298_v29, %v2297_v28 }
 0x169   : > { %v714_v36 = vmax.f32 %v708_v33, 0.0  ;;  %v3008_v37 = vpop.f32.mrb[2].mxu0  ;;  %v2300_v33 = vld [vmem:[%s5124_s1 + $0x4e8] sm:$0xff] }
 0x16a   : > { %v733_v39 = vsel %vm4285_vm4, %v4289_v34, 0.0  ;;  %v711_v40 = vadd.f32 %v3008_v37, %v2286_v24  ;;  %v676_v41 = vpop.f32.mrb[3].mxu0  ;;  %v3497_v35 = vpack.c.bf16 %v2300_v33, %v2299_v31  ;;  %v2302_v37 = vld [vmem:[%s5124_s1 + $0x4f8] sm:$0xff]  ;;  %v3525_v33 = vpack.c.bf16 %v2330_v26, %v2329_v25  ;;  %v2355_v25 = vld [vmem:[%s5124_s1 + $0x7a0] sm:$0xff]  ;;  %v2356_v26 = vld [vmem:[%s5124_s1 + $0x7a8] sm:$0xff] }
 0x16b   : > { %739 = vst [vmem:[#allocation3 + $0x20] sm:$0xff] %v733_v39  ;;  %v732_v42 = vsel %vm336_vm5, %v714_v36, 0.0  ;;  %v710_v44 = vadd.f32 %v2286_v24, %v676_v41  ;;  %v793_v6 = vrot.slane %v733_v39, 4  ;;  %v2301_v36 = vld [vmem:[%s5124_s1 + $0x4f0] sm:$0xff]  ;;  %v2319_v39 = vld [vmem:[%s5124_s1 + $0x600] sm:$0xff]  ;;  %v2408_v31 = vld [vmem:[%s5124_s1 + $0x9b8] sm:$0xff] }
 0x16c   : > { %738 = vst [vmem:[#allocation3 + $0x10] sm:$0xff] %v732_v42  ;;  %v4298_v45 = vmax.f32 %v711_v40, 0.0  ;;  %v3501_v38 = vpack.c.bf16 %v2302_v37, %v2301_v36  ;;  %v2320_v40 = vld [vmem:[%s5124_s1 + $0x608] sm:$0xff]  ;;  %v2321_v42 = vld [vmem:[%s5124_s1 + $0x610] sm:$0xff]  ;;  %v2331_v37 = vld [vmem:[%s5124_s1 + $0x660] sm:$0xff] }
 0x16d   : > { %v4304_v47 = vmax.f32 %v710_v44, 0.0  ;;  %v3011_v48 = vpop.f32.mrb[4].mxu0  ;;  %v3505_v41 = vpack.c.bf16 %v2320_v40, %v2319_v39  ;;  %v2322_v44 = vld [vmem:[%s5124_s1 + $0x618] sm:$0xff]  ;;  %v2426_v36 = vld [vmem:[%s5124_s1 + $0xa48] sm:$0xff] }
 0x16e   : > { %v735_v49 = vsel %vm4294_vm10, %v4298_v45, 0.0  ;;  %v713_v50 = vadd.f32 %v3011_v48, %v2286_v24  ;;  %v686_v51 = vpop.f32.mrb[5].mxu0  ;;  %v4399_v48 = vld [vmem:[%s4046_s7 + $0x14] sm:$0xff] }
 0x16f   : > { %741 = vst [vmem:[#allocation3 + $0x40] sm:$0xff] %v735_v49  ;;  %2098 = vst [vmem:[%s4026_s4 + $0x18] sm:$0xff] %v735_v49  ;;  %v734_v52 = vsel %vm4300_vm11, %v4304_v47, 0.0  ;;  %v712_v53 = vadd.f32 %v2286_v24, %v686_v51  ;;  %v797_v7 = vrot.slane %v735_v49, 4  ;;  %v3509_v49 = vpack.c.bf16 %v2322_v44, %v2321_v42  ;;  %v2323_v51 = vld [vmem:[%s5124_s1 + $0x620] sm:$0xff]  ;;  %v2333_v42 = vld [vmem:[%s5124_s1 + $0x670] sm:$0xff] }
 0x170   : > { %740 = vst [vmem:[#allocation3 + $0x30] sm:$0xff] %v734_v52  ;;  %2096 = vst [vmem:[%s4026_s4] sm:$0xff] %v734_v52  ;;  %v719_v54 = vmax.f32 %v713_v50, 0.0  ;;  %v795_v2 = vrot.slane %v734_v52, 4  ;;  %v4402_v50 = vld [vmem:[%s4046_s7 + $0x1c] sm:$0xff]  ;;  %v2324_v52 = vld [vmem:[%s5124_s1 + $0x628] sm:$0xff] }
 0x171   : > { %v4318_v58 = vmax.f32 %v712_v53, 0.0  ;;  %v4413_v53 = vld [vmem:[%s4046_s7 + $0x24] sm:$0xff]  ;;  %v2334_v44 = vld [vmem:[%s5124_s1 + $0x678] sm:$0xff] }
 0x172   : > { %v737_v59 = vsel %vm341_vm0, %v719_v54, 0.0  ;;  %v1301_v63 = vld [vmem:[#allocation3 + $0x20] sm:$0xf0]  ;;  %v796_v14 = vsel %vm791_vm2, %v793_v6, %v795_v2  ;;  %v4350_v17 = vsel %vm791_vm2, %v795_v2, %v797_v7  ;;  %v3513_v54 = vpack.c.bf16 %v2324_v52, %v2323_v51  ;;  %v2336_v52 = vld [vmem:[%s5124_s1 + $0x688] sm:$0xff] }
 0x173   : > { %743 = vst [vmem:[#allocation3 + $0x60] sm:$0xff] %v737_v59  ;;  %v4326_v0 = vsel %vm4314_vm1, %v4318_v58, 0.0  ;;  %v765_v1 = vld [vmem:[#allocation3 + $0x10] sm:$0xf0]  ;;  %v1327_v4 = vrot.slane %v1301_v63, 4  ;;  %v2417_v63 = vld [vmem:[%s5124_s1 + $0xa00] sm:$0xff] }
 0x174   : > { %742 = vst [vmem:[#allocation3 + $0x50] sm:$0xff] %v4326_v0  ;;  %v792_v5 = vrot.slane %v765_v1, 4  ;;  %v1332_v9 = vrot.slane %v4326_v0, 4  ;;  %v2325_v59 = vld [vmem:[%s5124_s1 + $0x630] sm:$0xff]  ;;  %v2418_v1 = vld [vmem:[%s5124_s1 + $0xa08] sm:$0xff]  ;;  %v2335_v51 = vld [vmem:[%s5124_s1 + $0x680] sm:$0xff] }
 0x175   : > { %v4334_v10 = vsel %vm791_vm2, %v1327_v4, %v795_v2  ;;  %v2401_v2 = vld [vmem:[%s5124_s1 + $0x980] sm:$0xff]  ;;  %v3633_v3 = vpack.c.bf16 %v2418_v1, %v2417_v63  ;;  %v2402_v4 = vld [vmem:[%s5124_s1 + $0x988] sm:$0xff] }
 0x176   : > { %v794_v11 = vsel %vm791_vm2, %v792_v5, %v793_v6  ;;  %v4340_v13 = vsel %vm791_vm2, %v797_v7, %v1332_v9  ;;  %v2419_v5 = vld [vmem:[%s5124_s1 + $0xa10] sm:$0xff]  ;;  %v2420_v6 = vld [vmem:[%s5124_s1 + $0xa18] sm:$0xff]  ;;  %v2339_v1 = vld [vmem:[%s5124_s1 + $0x6a0] sm:$0xff] }
 0x177   : > { %3044 = vmatprep.mubr.f32.mxu1 %v794_v11  ;;  %v3635_v11 = vpack.c.bf16 %v2402_v4, %v2401_v2  ;;  %3634 = vmatprep.subr.bf16.mxu0 %v3633_v3  ;;  %v2340_v2 = vld [vmem:[%s5124_s1 + $0x6a8] sm:$0xff]  ;;  %v2341_v4 = vld [vmem:[%s5124_s1 + $0x6b0] sm:$0xff] }
 0x178   : > { %3045 = vmatmul.mubr.f32.vlgmr.msra.gmra.mrb[0].mxu1 %v796_v14  ;;  %v2404_v14 = vld [vmem:[%s5124_s1 + $0x998] sm:$0xff]  ;;  %v3545_v3 = vpack.c.bf16 %v2340_v2, %v2339_v1  ;;  %v2372_v1 = vld [vmem:[%s5124_s1 + $0x828] sm:$0xff] }
 0x179   : > { %3476 = vmatpush3.bf16.msra.mxu1 %v4277_v8  ;;  %3047 = vmatprep.mubr.f32.mxu1 %v4350_v17  ;;  %v3485_v8 = vpack.c.bf16 %v2294_v21, %v2293_v20  ;;  %v2422_v20 = vld [vmem:[%s5124_s1 + $0xa28] sm:$0xff] }
 0x17a   : > { %3478 = vmatprep.subr.bf16.mxu1 %v3477_v12  ;;  %3636 = vmatpush3.bf16.msra.mxu0 %v3635_v11  ;;  %v2346_v11 = vld [vmem:[%s5124_s1 + $0x6d8] sm:$0xff]  ;;  %v1194_v2 = vld [vmem:[%s4046_s7 + $0x2c] sm:$0xff] }
 0x17b   : > { %v769_v19 = vld [vmem:[#allocation3 + $0x50] sm:$0xf] }
 0x17c   : > { %v799_v22 = vrot.slane %v769_v19, 4  ;;  %v2421_v19 = vld [vmem:[%s5124_s1 + $0xa20] sm:$0xff] }
 0x17d   : > { %3480 = vmatpush3.bf16.msra.mxu1 %v3477_v12  ;;  %v3637_v12 = vpack.c.bf16 %v2420_v6, %v2419_v5  ;;  %v3641_v21 = vpack.c.bf16 %v2422_v20, %v2421_v19  ;;  %v2342_v5 = vld [vmem:[%s5124_s1 + $0x6b8] sm:$0xff]  ;;  %v2344_v6 = vld [vmem:[%s5124_s1 + $0x6c8] sm:$0xff]  ;;  %v2351_v20 = vld [vmem:[%s5124_s1 + $0x780] sm:$0xff] }
 0x17e   : > { %v800_v24 = vsel %vm791_vm2, %v797_v7, %v799_v22  ;;  %3482 = vmatprep.subr.bf16.mxu1 %v3481_v18  ;;  %v3517_v7 = vpack.c.bf16 %v2326_v61, %v2325_v59  ;;  %v2405_v22 = vld [vmem:[%s5124_s1 + $0x9a0] sm:$0xff]  ;;  %v2337_v59 = vld [vmem:[%s5124_s1 + $0x690] sm:$0xff]  ;;  %v2338_v61 = vld [vmem:[%s5124_s1 + $0x698] sm:$0xff] }
 0x17f   : > { %3048 = vmatmul.mubr.f32.gmra.mrb[2].mxu1 %v800_v24  ;;  %3638 = vmatprep.subr.bf16.mxu0 %v3637_v12  ;;  %v3521_v24 = vpack.c.bf16 %v2328_v16, %v2327_v15  ;;  %v3541_v63 = vpack.c.bf16 %v2338_v61, %v2337_v59  ;;  %v2349_v16 = vld [vmem:[%s5124_s1 + $0x6f0] sm:$0xff]  ;;  %v2370_v59 = vld [vmem:[%s5124_s1 + $0x818] sm:$0xff] }
 0x180   : > { %3082 = vmatprep.mubr.f32.mxu1 %v744_v23  ;;  %v2406_v23 = vld [vmem:[%s5124_s1 + $0x9a8] sm:$0xff] }
 0x181   : > { %3484 = vmatpush3.bf16.msra.mxu1 %v3481_v18  ;;  %v3643_v28 = vpack.c.bf16 %v2406_v23, %v2405_v22  ;;  %v2353_v23 = vld [vmem:[%s5124_s1 + $0x790] sm:$0xff] }
 0x182   : > { %3486 = vmatprep.subr.bf16.mxu1 %v3485_v8 }
 0x185   : > { %3488 = vmatpush3.bf16.msra.mxu1 %v3485_v8  ;;  %v2423_v8 = vld [vmem:[%s5124_s1 + $0xa30] sm:$0xff] }
 0x186   : > { %3490 = vmatprep.subr.bf16.mxu1 %v3489_v27 }
 0x189   : > { %3492 = vmatpush3.bf16.msra.mxu1 %v3489_v27  ;;  %v2424_v27 = vld [vmem:[%s5124_s1 + $0xa38] sm:$0xff] }
 0x18a   : > { %3494 = vmatprep.subr.bf16.mxu1 %v3493_v30  ;;  %v3645_v29 = vpack.c.bf16 %v2424_v27, %v2423_v8  ;;  %v3577_v27 = vpack.c.bf16 %v2356_v26, %v2355_v25  ;;  %v2499_v26 = vld [vmem:[%s5124_s1 + $0xc90] sm:$0xff] }
 0x18d   : > { %3496 = vmatpush3.bf16.msra.mxu1 %v3493_v30  ;;  %v2407_v30 = vld [vmem:[%s5124_s1 + $0x9b0] sm:$0xff] }
 0x18e   : > { %3498 = vmatprep.subr.bf16.mxu1 %v3497_v35  ;;  %v3647_v39 = vpack.c.bf16 %v2408_v31, %v2407_v30  ;;  %v2359_v31 = vld [vmem:[%s5124_s1 + $0x7c0] sm:$0xff] }
 0x191   : > { %3500 = vmatpush3.bf16.msra.mxu1 %v3497_v35  ;;  %v2425_v35 = vld [vmem:[%s5124_s1 + $0xa40] sm:$0xff] }
 0x192   : > { %3502 = vmatprep.subr.bf16.mxu1 %v3501_v38  ;;  %v3649_v40 = vpack.c.bf16 %v2426_v36, %v2425_v35  ;;  %v2361_v36 = vld [vmem:[%s5124_s1 + $0x7d0] sm:$0xff] }
 0x195   : > { %3504 = vmatpush3.bf16.msra.mxu1 %v3501_v38  ;;  %v2332_v38 = vld [vmem:[%s5124_s1 + $0x668] sm:$0xff] }
 0x196   : > { %3506 = vmatprep.subr.bf16.mxu1 %v3505_v41 }
 0x198   : > { %3083 = vmatmul.mubr.f32.vlgmr.msra.gmra.mrb[0].mxu1 %v4399_v48 }
 0x199   : > { %3508 = vmatpush3.bf16.msra.mxu1 %v3505_v41  ;;  %3085 = vmatprep.mubr.f32.mxu1 %v4402_v50  ;;  %v3529_v41 = vpack.c.bf16 %v2332_v38, %v2331_v37  ;;  %v2363_v38 = vld [vmem:[%s5124_s1 + $0x7e0] sm:$0xff] }
 0x19a   : > { %3510 = vmatprep.subr.bf16.mxu1 %v3509_v49 }
 0x19c   : > { %3086 = vmatmul.mubr.f32.gmra.mrb[2].mxu1 %v4413_v53 }
 0x19d   : > { %3512 = vmatpush3.bf16.msra.mxu1 %v3509_v49  ;;  %3120 = vmatprep.mubr.f32.mxu1 %v4129_v55  ;;  %v2403_v55 = vld [vmem:[%s5124_s1 + $0x990] sm:$0xff]  ;;  %v3533_v49 = vpack.c.bf16 %v2334_v44, %v2333_v42  ;;  %v2366_v42 = vld [vmem:[%s5124_s1 + $0x7f8] sm:$0xff] }
 0x19e   : > { %3514 = vmatprep.subr.bf16.mxu1 %v3513_v54  ;;  %v3639_v18 = vpack.c.bf16 %v2404_v14, %v2403_v55  ;;  %v2347_v55 = vld [vmem:[%s5124_s1 + $0x6e0] sm:$0xff]  ;;  %v2348_v14 = vld [vmem:[%s5124_s1 + $0x6e8] sm:$0xff] }
 0x19f   : > { %v3561_v15 = vpack.c.bf16 %v2348_v14, %v2347_v55  ;;  %v2381_v55 = vld [vmem:[%s5124_s1 + $0x870] sm:$0xff]  ;;  %v2382_v14 = vld [vmem:[%s5124_s1 + $0x878] sm:$0xff] }
 0x1a0   : > { %3640 = vmatpush3.bf16.msra.mxu0 %v3639_v18  ;;  %v2350_v18 = vld [vmem:[%s5124_s1 + $0x6f8] sm:$0xff] }
 0x1a1   : > { %3516 = vmatpush3.bf16.msra.mxu1 %v3513_v54  ;;  %3642 = vmatprep.subr.bf16.mxu0 %v3641_v21  ;;  %v3537_v54 = vpack.c.bf16 %v2336_v52, %v2335_v51  ;;  %v3565_v19 = vpack.c.bf16 %v2350_v18, %v2349_v16  ;;  %v2352_v21 = vld [vmem:[%s5124_s1 + $0x788] sm:$0xff]  ;;  %v2513_v16 = vld [vmem:[%s5124_s1 + $0xd00] sm:$0xff] }
 0x1a2   : > { %3518 = vmatprep.subr.bf16.mxu1 %v3517_v7  ;;  %v3569_v22 = vpack.c.bf16 %v2352_v21, %v2351_v20  ;;  %v2368_v51 = vld [vmem:[%s5124_s1 + $0x808] sm:$0xff]  ;;  %v2497_v20 = vld [vmem:[%s5124_s1 + $0xc80] sm:$0xff] }
 0x1a3   : > { %v2514_v18 = vld [vmem:[%s5124_s1 + $0xd08] sm:$0xff] }
 0x1a4   : > { %3644 = vmatpush3.bf16.msra.mxu0 %v3643_v28  ;;  %v2357_v28 = vld [vmem:[%s5124_s1 + $0x7b0] sm:$0xff]  ;;  %v2498_v21 = vld [vmem:[%s5124_s1 + $0xc88] sm:$0xff] }
 0x1a5   : > { %3520 = vmatpush3.bf16.msra.mxu1 %v3517_v7  ;;  %3646 = vmatprep.subr.bf16.mxu0 %v3645_v29  ;;  %v2358_v29 = vld [vmem:[%s5124_s1 + $0x7b8] sm:$0xff] }
 0x1a6   : > { %3522 = vmatprep.subr.bf16.mxu1 %v3521_v24  ;;  %v3581_v30 = vpack.c.bf16 %v2358_v29, %v2357_v28  ;;  %v2517_v29 = vld [vmem:[%s5124_s1 + $0xd20] sm:$0xff] }
 0x1a8   : > { %3648 = vmatpush3.bf16.msra.mxu0 %v3647_v39  ;;  %v2364_v39 = vld [vmem:[%s5124_s1 + $0x7e8] sm:$0xff] }
 0x1a9   : > { %3524 = vmatpush3.bf16.msra.mxu1 %v3521_v24  ;;  %3650 = vmatprep.subr.bf16.mxu0 %v3649_v40  ;;  %v2354_v24 = vld [vmem:[%s5124_s1 + $0x798] sm:$0xff]  ;;  %v3593_v40 = vpack.c.bf16 %v2364_v39, %v2363_v38  ;;  %v2519_v38 = vld [vmem:[%s5124_s1 + $0xd30] sm:$0xff] }
 0x1aa   : > { %3526 = vmatprep.subr.bf16.mxu1 %v3525_v33  ;;  %v3573_v8 = vpack.c.bf16 %v2354_v24, %v2353_v23  ;;  %v2516_v23 = vld [vmem:[%s5124_s1 + $0xd18] sm:$0xff]  ;;  %v1305_v24 = vld [vmem:[#allocation3 + $0x60] sm:$0xf]  ;;  %v2503_v39 = vld [vmem:[%s5124_s1 + $0xcb0] sm:$0xff] }
 0x1ab   : > { %v1334_v28 = vrot.slane %v1305_v24, 4  ;;  %v2510_v24 = vld [vmem:[%s5124_s1 + $0xce8] sm:$0xff] }
 0x1ad   : > { %3528 = vmatpush3.bf16.msra.mxu1 %v3525_v33  ;;  %v2360_v33 = vld [vmem:[%s5124_s1 + $0x7c8] sm:$0xff] }
 0x1ae   : > { %3530 = vmatprep.subr.bf16.mxu1 %v3529_v41  ;;  %v3585_v35 = vpack.c.bf16 %v2360_v33, %v2359_v31 }
 0x1b1   : > { %3532 = vmatpush3.bf16.msra.mxu1 %v3529_v41  ;;  %v2365_v41 = vld [vmem:[%s5124_s1 + $0x7f0] sm:$0xff] }
 0x1b2   : > { %3534 = vmatprep.subr.bf16.mxu1 %v3533_v49  ;;  %v3597_v44 = vpack.c.bf16 %v2366_v42, %v2365_v41 }
 0x1b5   : > { %3536 = vmatpush3.bf16.msra.mxu1 %v3533_v49  ;;  %v2367_v49 = vld [vmem:[%s5124_s1 + $0x800] sm:$0xff] }
 0x1b6   : > { %3538 = vmatprep.subr.bf16.mxu1 %v3537_v54  ;;  %v3601_v52 = vpack.c.bf16 %v2368_v51, %v2367_v49  ;;  %v2428_v49 = vld [vmem:[%s5124_s1 + $0xa58] sm:$0xff] }
 0x1b8   : > { %3121 = vmatmul.mubr.f32.vlgmr.msra.gmra.mrb[0].mxu1 %v4132_v57  ;;  %v3549_v57 = vpack.c.bf16 %v2342_v5, %v2341_v4  ;;  %v2373_v4 = vld [vmem:[%s5124_s1 + $0x830] sm:$0xff]  ;;  %v2374_v5 = vld [vmem:[%s5124_s1 + $0x838] sm:$0xff] }
 0x1b9   : > { %3540 = vmatpush3.bf16.msra.mxu1 %v3537_v54  ;;  %3123 = vmatprep.mubr.f32.mxu1 %v4143_v60  ;;  %v2343_v60 = vld [vmem:[%s5124_s1 + $0x6c0] sm:$0xff]  ;;  %v2369_v54 = vld [vmem:[%s5124_s1 + $0x810] sm:$0xff] }
 0x1ba   : > { %3542 = vmatprep.subr.bf16.mxu1 %v3541_v63  ;;  %v3553_v7 = vpack.c.bf16 %v2344_v6, %v2343_v60  ;;  %v3605_v61 = vpack.c.bf16 %v2370_v59, %v2369_v54  ;;  %v2377_v6 = vld [vmem:[%s5124_s1 + $0x850] sm:$0xff]  ;;  %v2412_v54 = vld [vmem:[%s5124_s1 + $0x9d8] sm:$0xff]  ;;  %v2521_v59 = vld [vmem:[%s5124_s1 + $0xd40] sm:$0xff] }
 0x1bc   : > { %3124 = vmatmul.mubr.f32.gmra.mrb[2].mxu1 %v4146_v62  ;;  %v2345_v62 = vld [vmem:[%s5124_s1 + $0x6d0] sm:$0xff] }
 0x1bd   : > { %3544 = vmatpush3.bf16.msra.mxu1 %v3541_v63  ;;  %3907 = vmatprep.mubr.msk.f32.mxu1 %vm4285_vm4, %v4289_v34  ;;  %v3557_v12 = vpack.c.bf16 %v2346_v11, %v2345_v62  ;;  %v2371_v63 = vld [vmem:[%s5124_s1 + $0x820] sm:$0xff]  ;;  %v2380_v11 = vld [vmem:[%s5124_s1 + $0x868] sm:$0xff] }
 0x1be   : > { %3546 = vmatprep.subr.bf16.mxu1 %v3545_v3  ;;  %v2379_v62 = vld [vmem:[%s5124_s1 + $0x860] sm:$0xff] }
 0x1c1   : > { %3548 = vmatpush3.bf16.msra.mxu1 %v3545_v3  ;;  %v3609_v3 = vpack.c.bf16 %v2372_v1, %v2371_v63  ;;  %v2522_v63 = vld [vmem:[%s5124_s1 + $0xd48] sm:$0xff]  ;;  %v2505_v1 = vld [vmem:[%s5124_s1 + $0xcc0] sm:$0xff] }
 0x1c2   : > { %3550 = vmatprep.subr.bf16.mxu1 %v3549_v57 }
 0x1c5   : > { %3552 = vmatpush3.bf16.msra.mxu1 %v3549_v57  ;;  %v2376_v57 = vld [vmem:[%s5124_s1 + $0x848] sm:$0xff] }
 0x1c6   : > { %3554 = vmatprep.subr.bf16.mxu1 %v3553_v7 }
 0x1c9   : > { %3556 = vmatpush3.bf16.msra.mxu1 %v3553_v7 }
 0x1ca   : > { %3558 = vmatprep.subr.bf16.mxu1 %v3557_v12 }
 0x1cd   : > { %3560 = vmatpush3.bf16.msra.mxu1 %v3557_v12  ;;  %v3625_v12 = vpack.c.bf16 %v2380_v11, %v2379_v62  ;;  %v2507_v62 = vld [vmem:[%s5124_s1 + $0xcd0] sm:$0xff]  ;;  %v2508_v11 = vld [vmem:[%s5124_s1 + $0xcd8] sm:$0xff] }
 0x1ce   : > { %3562 = vmatprep.subr.bf16.mxu1 %v3561_v15 }
 0x1d1   : > { %3564 = vmatpush3.bf16.msra.mxu1 %v3561_v15  ;;  %v3629_v15 = vpack.c.bf16 %v2382_v14, %v2381_v55  ;;  %v3815_v55 = vpack.c.bf16 %v2508_v11, %v2507_v62  ;;  %v2431_v14 = vld [vmem:[%s5124_s1 + $0xa70] sm:$0xff]  ;;  %v2433_v62 = vld [vmem:[%s5124_s1 + $0xa80] sm:$0xff]  ;;  %v2434_v11 = vld [vmem:[%s5124_s1 + $0xa88] sm:$0xff] }
 0x1d2   : > { %3566 = vmatprep.subr.bf16.mxu1 %v3565_v19 }
 0x1d5   : > { %3568 = vmatpush3.bf16.msra.mxu1 %v3565_v19  ;;  %v3793_v19 = vpack.c.bf16 %v2514_v18, %v2513_v16  ;;  %v2415_v18 = vld [vmem:[%s5124_s1 + $0x9f0] sm:$0xff] }
 0x1d6   : > { %3570 = vmatprep.subr.bf16.mxu1 %v3569_v22 }
 0x1d8   : > { %3908 = vmatmul.mubr.msk.f32.vlgmr.msra.gmra.mrb[0].mxu1 %vm4300_vm11, %v4304_v47 }
 0x1d9   : > { %3909 = vmatprep.mubr.msk.f32.mxu1 %vm4294_vm10, %v4298_v45  ;;  %3572 = vmatpush3.bf16.msra.mxu1 %v3569_v22  ;;  %v2515_v22 = vld [vmem:[%s5124_s1 + $0xd10] sm:$0xff] }
 0x1da   : > { %3574 = vmatprep.subr.bf16.mxu1 %v3573_v8  ;;  %v3797_v25 = vpack.c.bf16 %v2516_v23, %v2515_v22  ;;  %v2526_v22 = vld [vmem:[%s5124_s1 + $0xd68] sm:$0xff]  ;;  %v2509_v23 = vld [vmem:[%s5124_s1 + $0xce0] sm:$0xff] }
 0x1dc   : > { %3910 = vmatmul.mubr.msk.f32.gmra.mrb[2].mxu1 %vm4314_vm1, %v4318_v58 }
 0x1dd   : > { %3576 = vmatpush3.bf16.msra.mxu1 %v3573_v8  ;;  %3196 = vmatprep.mubr.f32.mxu1 %v4399_v48  ;;  %v2362_v48 = vld [vmem:[%s5124_s1 + $0x7d8] sm:$0xff]  ;;  %v3795_v8 = vpack.c.bf16 %v2498_v21, %v2497_v20  ;;  %v2525_v20 = vld [vmem:[%s5124_s1 + $0xd60] sm:$0xff] }
 0x1de   : > { %3578 = vmatprep.subr.bf16.mxu1 %v3577_v27  ;;  %v3589_v37 = vpack.c.bf16 %v2362_v48, %v2361_v36  ;;  %v2502_v36 = vld [vmem:[%s5124_s1 + $0xca8] sm:$0xff]  ;;  %v1335_v48 = vsel %vm791_vm2, %v1332_v9, %v1334_v28  ;;  %v2520_v9 = vld [vmem:[%s5124_s1 + $0xd38] sm:$0xff] }
 0x1df   : > { %v3805_v41 = vpack.c.bf16 %v2520_v9, %v2519_v38  ;;  %v2387_v9 = vld [vmem:[%s5124_s1 + $0x910] sm:$0xff] }
 0x1e1   : > { %3580 = vmatpush3.bf16.msra.mxu1 %v3577_v27  ;;  %v2500_v27 = vld [vmem:[%s5124_s1 + $0xc98] sm:$0xff] }
 0x1e2   : > { %3582 = vmatprep.subr.bf16.mxu1 %v3581_v30  ;;  %v3799_v31 = vpack.c.bf16 %v2500_v27, %v2499_v26  ;;  %v2385_v26 = vld [vmem:[%s5124_s1 + $0x900] sm:$0xff]  ;;  %v2386_v27 = vld [vmem:[%s5124_s1 + $0x908] sm:$0xff] }
 0x1e3   : > { %v3665_v28 = vpack.c.bf16 %v2386_v27, %v2385_v26  ;;  %v2443_v26 = vld [vmem:[%s5124_s1 + $0xad0] sm:$0xff]  ;;  %v2444_v27 = vld [vmem:[%s5124_s1 + $0xad8] sm:$0xff] }
 0x1e5   : > { %3584 = vmatpush3.bf16.msra.mxu1 %v3581_v30  ;;  %v2518_v30 = vld [vmem:[%s5124_s1 + $0xd28] sm:$0xff] }
 0x1e6   : > { %3586 = vmatprep.subr.bf16.mxu1 %v3585_v35  ;;  %v3801_v33 = vpack.c.bf16 %v2518_v30, %v2517_v29  ;;  %v2527_v29 = vld [vmem:[%s5124_s1 + $0xd70] sm:$0xff]  ;;  %v2528_v30 = vld [vmem:[%s5124_s1 + $0xd78] sm:$0xff] }
 0x1e9   : > { %3588 = vmatpush3.bf16.msra.mxu1 %v3585_v35  ;;  %v2501_v35 = vld [vmem:[%s5124_s1 + $0xca0] sm:$0xff] }
 0x1ea   : > { %3590 = vmatprep.subr.bf16.mxu1 %v3589_v37 }
 0x1ed   : > { %3592 = vmatpush3.bf16.msra.mxu1 %v3589_v37  ;;  %v2410_v37 = vld [vmem:[%s5124_s1 + $0x9c8] sm:$0xff] }
 0x1ee   : > { %3594 = vmatprep.subr.bf16.mxu1 %v3593_v40 }
 0x1f1   : > { %3596 = vmatpush3.bf16.msra.mxu1 %v3593_v40  ;;  %v2504_v40 = vld [vmem:[%s5124_s1 + $0xcb8] sm:$0xff] }
 0x1f2   : > { %3598 = vmatprep.subr.bf16.mxu1 %v3597_v44  ;;  %v3807_v42 = vpack.c.bf16 %v2504_v40, %v2503_v39  ;;  %v2388_v39 = vld [vmem:[%s5124_s1 + $0x918] sm:$0xff] }
 0x1f5   : > { %3600 = vmatpush3.bf16.msra.mxu1 %v3597_v44  ;;  %v2427_v44 = vld [vmem:[%s5124_s1 + $0xa50] sm:$0xff] }
 0x1f6   : > { %3602 = vmatprep.subr.bf16.mxu1 %v3601_v52  ;;  %v3653_v51 = vpack.c.bf16 %v2428_v49, %v2427_v44 }
 0x1f8   : > { %3197 = vmatmul.mubr.f32.vlgmr.msra.gmra.mrb[0].mxu1 %v4402_v50  ;;  %v3613_v50 = vpack.c.bf16 %v2374_v5, %v2373_v4  ;;  %v2429_v5 = vld [vmem:[%s5124_s1 + $0xa60] sm:$0xff] }
 0x1f9   : > { %3604 = vmatpush3.bf16.msra.mxu1 %v3601_v52  ;;  %3199 = vmatprep.mubr.f32.mxu1 %v4413_v53  ;;  %v2375_v53 = vld [vmem:[%s5124_s1 + $0x840] sm:$0xff]  ;;  %v2411_v52 = vld [vmem:[%s5124_s1 + $0x9d0] sm:$0xff] }
 0x1fa   : > { %3606 = vmatprep.subr.bf16.mxu1 %v3605_v61  ;;  %v3617_v60 = vpack.c.bf16 %v2376_v57, %v2375_v53  ;;  %v2413_v57 = vld [vmem:[%s5124_s1 + $0x9e0] sm:$0xff] }
 0x1fc   : > { %3200 = vmatmul.mubr.f32.gmra.mrb[2].mxu1 %v1194_v2  ;;  %v2506_v2 = vld [vmem:[%s5124_s1 + $0xcc8] sm:$0xff] }
 0x1fd   : > { %3608 = vmatpush3.bf16.msra.mxu1 %v3605_v61  ;;  %3234 = vmatprep.mubr.f32.mxu1 %v4334_v10  ;;  %v2378_v10 = vld [vmem:[%s5124_s1 + $0x858] sm:$0xff]  ;;  %v3655_v61 = vpack.c.bf16 %v2412_v54, %v2411_v52  ;;  %v3811_v4 = vpack.c.bf16 %v2506_v2, %v2505_v1  ;;  %v3669_v52 = vpack.c.bf16 %v2388_v39, %v2387_v9  ;;  %v2467_v9 = vld [vmem:[%s5124_s1 + $0xb90] sm:$0xff] }
 0x1fe   : > { %3610 = vmatprep.subr.bf16.mxu1 %v3609_v3  ;;  %v3621_v7 = vpack.c.bf16 %v2378_v10, %v2377_v6  ;;  %v2523_v6 = vld [vmem:[%s5124_s1 + $0xd50] sm:$0xff]  ;;  %v2468_v39 = vld [vmem:[%s5124_s1 + $0xb98] sm:$0xff] }
 0x201   : > { %3612 = vmatpush3.bf16.msra.mxu1 %v3609_v3  ;;  %v3809_v3 = vpack.c.bf16 %v2522_v63, %v2521_v59  ;;  %v2389_v59 = vld [vmem:[%s5124_s1 + $0x920] sm:$0xff] }
 0x202   : > { %3614 = vmatprep.subr.bf16.mxu1 %v3613_v50 }
 0x205   : > { %3616 = vmatpush3.bf16.msra.mxu1 %v3613_v50  ;;  %v2430_v50 = vld [vmem:[%s5124_s1 + $0xa68] sm:$0xff] }
 0x206   : > { %3618 = vmatprep.subr.bf16.mxu1 %v3617_v60  ;;  %v3657_v53 = vpack.c.bf16 %v2430_v50, %v2429_v5  ;;  %v2393_v5 = vld [vmem:[%s5124_s1 + $0x940] sm:$0xff]  ;;  %v2394_v50 = vld [vmem:[%s5124_s1 + $0x948] sm:$0xff] }
 0x209   : > { %3620 = vmatpush3.bf16.msra.mxu1 %v3617_v60  ;;  %v2414_v60 = vld [vmem:[%s5124_s1 + $0x9e8] sm:$0xff] }
 0x20a   : > { %3622 = vmatprep.subr.bf16.mxu1 %v3621_v7  ;;  %v3659_v10 = vpack.c.bf16 %v2414_v60, %v2413_v57  ;;  %v2397_v60 = vld [vmem:[%s5124_s1 + $0x960] sm:$0xff] }
 0x20d   : > { %3624 = vmatpush3.bf16.msra.mxu1 %v3621_v7  ;;  %v2524_v7 = vld [vmem:[%s5124_s1 + $0xd58] sm:$0xff] }
 0x20e   : > { %3626 = vmatprep.subr.bf16.mxu1 %v3625_v12 }
 0x211   : > { %3628 = vmatpush3.bf16.msra.mxu1 %v3625_v12  ;;  %v3813_v12 = vpack.c.bf16 %v2524_v7, %v2523_v6  ;;  %v2399_v6 = vld [vmem:[%s5124_s1 + $0x970] sm:$0xff] }
 0x212   : > { %3630 = vmatprep.subr.bf16.mxu1 %v3629_v15 }
 0x215   : > { %3632 = vmatpush3.bf16.msra.mxu1 %v3629_v15  ;;  %v2432_v15 = vld [vmem:[%s5124_s1 + $0xa78] sm:$0xff] }
 0x216   : > { %3794 = vmatprep.subr.bf16.mxu1 %v3793_v19  ;;  %v3661_v16 = vpack.c.bf16 %v2432_v15, %v2431_v14  ;;  %v2416_v19 = vld [vmem:[%s5124_s1 + $0x9f8] sm:$0xff] }
 0x217   : > { %v3663_v21 = vpack.c.bf16 %v2416_v19, %v2415_v18  ;;  %v2436_v14 = vld [vmem:[%s5124_s1 + $0xa98] sm:$0xff]  ;;  %v2437_v18 = vld [vmem:[%s5124_s1 + $0xaa0] sm:$0xff]  ;;  %v2438_v19 = vld [vmem:[%s5124_s1 + $0xaa8] sm:$0xff] }
 0x218   : > { %3235 = vmatmul.mubr.f32.vlgmr.msra.gmra.mrb[0].mxu1 %v4350_v17  ;;  %v3803_v17 = vpack.c.bf16 %v2502_v36, %v2501_v35  ;;  %v2512_v35 = vld [vmem:[%s5124_s1 + $0xcf8] sm:$0xff] }
 0x219   : > { %3237 = vmatprep.mubr.f32.mxu1 %v4340_v13  ;;  %3796 = vmatpush3.bf16.msra.mxu1 %v3795_v8  ;;  %v2409_v13 = vld [vmem:[%s5124_s1 + $0x9c0] sm:$0xff]  ;;  %v3817_v8 = vpack.c.bf16 %v2526_v22, %v2525_v20  ;;  %v1454_v15 = vld [vmem:[%s4046_s7 + $0x18] sm:$0xff]  ;;  %v3705_v20 = vpack.c.bf16 %v2438_v19, %v2437_v18 }
 0x21a   : > { %3798 = vmatprep.subr.bf16.mxu1 %v3797_v25  ;;  %v3651_v0 = vpack.c.bf16 %v2410_v37, %v2409_v13  ;;  %v3819_v25 = vpack.c.bf16 %v2510_v24, %v2509_v23  ;;  %v2440_v22 = vld [vmem:[%s5124_s1 + $0xab8] sm:$0xff]  ;;  %v2441_v24 = vld [vmem:[%s5124_s1 + $0xac0] sm:$0xff] }
 0x21b   : > { %v2480_v18 = vld [vmem:[%s5124_s1 + $0xbf8] sm:$0xff] }
 0x21c   : > { %3238 = vmatmul.mubr.f32.gmra.mrb[2].mxu1 %v1335_v48  ;;  %3652 = vmatpush3.bf16.msra.mxu0 %v3651_v0  ;;  %v2384_v48 = vld [vmem:[%s5125_s2 + $0x1] ss:$0 sm:$0xff] }
 0x21d   : > { %3800 = vmatpush3.bf16.msra.mxu1 %v3799_v31  ;;  %3654 = vmatprep.subr.bf16.mxu0 %v3653_v51  ;;  %v3821_v31 = vpack.c.bf16 %v2528_v30, %v2527_v29  ;;  %v2445_v29 = vld [vmem:[%s5124_s1 + $0xae0] sm:$0xff]  ;;  %v2446_v30 = vld [vmem:[%s5124_s1 + $0xae8] sm:$0xff] }
 0x21e   : > { %3802 = vmatprep.subr.bf16.mxu1 %v3801_v33  ;;  %v2511_v33 = vld [vmem:[%s5124_s1 + $0xcf0] sm:$0xff] }
 0x21f   : > { %v3823_v36 = vpack.c.bf16 %v2512_v35, %v2511_v33  ;;  %v2447_v33 = vld [vmem:[%s5124_s1 + $0xaf0] sm:$0xff]  ;;  %v2448_v35 = vld [vmem:[%s5124_s1 + $0xaf8] sm:$0xff] }
 0x220   : > { %3656 = vmatpush3.bf16.msra.mxu0 %v3655_v61  ;;  %v2390_v61 = vld [vmem:[%s5124_s1 + $0x928] sm:$0xff] }
 0x221   : > { %3804 = vmatpush3.bf16.msra.mxu1 %v3803_v17  ;;  %3658 = vmatprep.subr.bf16.mxu0 %v3657_v53  ;;  %v3673_v2 = vpack.c.bf16 %v2390_v61, %v2389_v59  ;;  %v2396_v53 = vld [vmem:[%s5124_s1 + $0x958] sm:$0xff]  ;;  %v2453_v61 = vld [vmem:[%s5124_s1 + $0xb20] sm:$0xff] }
 0x222   : > { %3806 = vmatprep.subr.bf16.mxu1 %v3805_v41 }
 0x224   : > { %3660 = vmatpush3.bf16.msra.mxu0 %v3659_v10  ;;  %v2400_v10 = vld [vmem:[%s5124_s1 + $0x978] sm:$0xff] }
 0x225   : > { %3808 = vmatpush3.bf16.msra.mxu1 %v3807_v42  ;;  %3662 = vmatprep.subr.bf16.mxu0 %v3661_v16  ;;  %v3693_v7 = vpack.c.bf16 %v2400_v10, %v2399_v6  ;;  %v2459_v10 = vld [vmem:[%s5124_s1 + $0xb50] sm:$0xff] }
 0x226   : > { %3810 = vmatprep.subr.bf16.mxu1 %v3809_v3  ;;  %v1453_v3 = vld [vmem:[%s4046_s7 + $0x10] sm:$0xff] }
 0x228   : > { %3664 = vmatpush3.bf16.msra.mxu0 %v3663_v21  ;;  %v2439_v21 = vld [vmem:[%s5124_s1 + $0xab0] sm:$0xff] }
 0x229   : > { %3812 = vmatpush3.bf16.msra.mxu1 %v3811_v4  ;;  %3666 = vmatprep.subr.bf16.mxu0 %v3665_v28  ;;  %v3709_v23 = vpack.c.bf16 %v2440_v22, %v2439_v21  ;;  %v2463_v21 = vld [vmem:[%s5124_s1 + $0xb70] sm:$0xff]  ;;  %v2464_v22 = vld [vmem:[%s5124_s1 + $0xb78] sm:$0xff] }
 0x22a   : > { %3814 = vmatprep.subr.bf16.mxu1 %v3813_v12  ;;  %v3697_v12 = vpack.c.bf16 %v2434_v11, %v2433_v62  ;;  %v2477_v62 = vld [vmem:[%s5124_s1 + $0xbe0] sm:$0xff]  ;;  %v2478_v11 = vld [vmem:[%s5124_s1 + $0xbe8] sm:$0xff] }
 0x22d   : > { %3816 = vmatpush3.bf16.msra.mxu1 %v3815_v55  ;;  %v2435_v55 = vld [vmem:[%s5124_s1 + $0xa90] sm:$0xff] }
 0x22e   : > { %3818 = vmatprep.subr.bf16.mxu1 %v3817_v8  ;;  %v3701_v16 = vpack.c.bf16 %v2436_v14, %v2435_v55  ;;  %v2442_v8 = vld [vmem:[%s5124_s1 + $0xac8] sm:$0xff]  ;;  %v3753_v55 = vpack.c.bf16 %v2478_v11, %v2477_v62  ;;  %v2461_v14 = vld [vmem:[%s5124_s1 + $0xb60] sm:$0xff] }
 0x22f   : > { %v2530_v11 = vld [vmem:[%s5125_s2 + $0x2] ss:$0 sm:$0xff] }
 0x231   : > { %3820 = vmatpush3.bf16.msra.mxu1 %v3819_v25  ;;  %v3713_v25 = vpack.c.bf16 %v2442_v8, %v2441_v24  ;;  %v2482_v24 = vld [vmem:[%s5124_s1 + $0xc08] sm:$0xff]  ;;  %v3759_v8 = vpack.c.bf16 %v2464_v22, %v2463_v21 }
 0x232   : > { %3822 = vmatprep.subr.bf16.mxu1 %v3821_v31  ;;  %v3721_v31 = vpack.c.bf16 %v2446_v30, %v2445_v29  ;;  %v1754_v29 = vld [vmem:[#allocation3 + $0x30] sm:$0xff]  ;;  %v2485_v30 = vld [vmem:[%s5124_s1 + $0xc20] sm:$0xff] }
 0x235   : > { %3824 = vmatpush3.bf16.msra.mxu1 %v3823_v36  ;;  %v3725_v36 = vpack.c.bf16 %v2448_v35, %v2447_v33  ;;  %v1756_v35 = vld [vmem:[#allocation3 + $0x40] sm:$0xff] }
 0x2eb   : > { %v3236_v17 = vpop.f32.mrb[0].mxu1 }
 0x2ec   : > { %v1438_v13 = vadd.f32 %v3236_v17, %v2384_v48  ;;  %v1406_v37 = vpop.f32.mrb[1].mxu1  ;;  %v2466_v17 = vld [vmem:[%s5124_s1 + $0xb88] sm:$0xff] }
 0x2ed   : > { %v1437_v38 = vadd.f32 %v2384_v48, %v1406_v37  ;;  %v2449_v37 = vld [vmem:[%s5124_s1 + $0xb00] sm:$0xff] }
 0x2ee   : > { %v4817_v0 = vmax.f32 %v1438_v13, 0.0 }
 0x2ef   : > { %v1441_v40 = vmax.f32 %v1437_v38, 0.0  ;;  %v3239_v41 = vpop.f32.mrb[2].mxu1  ;;  %v2450_v38 = vld [vmem:[%s5124_s1 + $0xb08] sm:$0xff] }
 0x2f0   : > { %v1446_v42 = vsel %vm4300_vm11, %v4817_v0, 0.0  ;;  %v1440_v44 = vadd.f32 %v3239_v41, %v2384_v48  ;;  %v1416_v49 = vpop.f32.mrb[3].mxu1  ;;  %v3731_v41 = vpack.c.bf16 %v2450_v38, %v2449_v37  ;;  %v2491_v38 = vld [vmem:[%s5124_s1 + $0xc50] sm:$0xff] }
 0x2f1   : > { %2097 = vst [vmem:[%s4026_s4 + $0x8] sm:$0xff] %v1446_v42  ;;  %v1439_v51 = vadd.f32 %v2384_v48, %v1416_v49  ;;  %3911 = vmatprep.mubr.msk.f32.mxu0 %vm4285_vm4, %v1441_v40  ;;  %v2465_v48 = vld [vmem:[%s5124_s1 + $0xb80] sm:$0xff]  ;;  %v3733_v42 = vpack.c.bf16 %v2468_v39, %v2467_v9  ;;  %v2452_v49 = vld [vmem:[%s5124_s1 + $0xb18] sm:$0xff] }
 0x2f2   : > { %v1444_v54 = vmax.f32 %v1440_v44, 0.0  ;;  %3912 = vmatmul.mubr.msk.f32.vlgmr.msra.gmra.mrb[6].mxu0 %vm4285_vm4, %v4289_v34  ;;  %v2392_v34 = vld [vmem:[%s5124_s1 + $0x938] sm:$0xff]  ;;  %v3729_v13 = vpack.c.bf16 %v2466_v17, %v2465_v48  ;;  %v4962_v40 = vld [vmem:[%s4046_s7 + $0x20] sm:$0xff]  ;;  %v2451_v44 = vld [vmem:[%s5124_s1 + $0xb10] sm:$0xff] }
 0x2f3   : > { %v4837_v63 = vmax.f32 %v1439_v51, 0.0  ;;  %3668 = vmatpush3.bf16.msra.mxu0 %v3665_v28  ;;  %3913 = vmatprep.mubr.msk.f32.mxu0 %vm4300_vm11, %v4817_v0  ;;  %v3677_v4 = vpack.c.bf16 %v2392_v34, %v2391_v32  ;;  %v3717_v28 = vpack.c.bf16 %v2444_v27, %v2443_v26  ;;  %v2469_v51 = vld [vmem:[%s5124_s1 + $0xba0] sm:$0xff]  ;;  %v2472_v32 = vld [vmem:[%s5124_s1 + $0xbb8] sm:$0xff]  ;;  %v2483_v26 = vld [vmem:[%s5124_s1 + $0xc10] sm:$0xff] }
 0x2f4   : > { %3670 = vmatprep.subr.bf16.mxu0 %v3669_v52  ;;  %v2484_v27 = vld [vmem:[%s5124_s1 + $0xc18] sm:$0xff] }
 0x2f5   : > { %v1447_v1 = vsel %vm4294_vm10, %v4837_v63, 0.0  ;;  %3914 = vmatprep.mubr.msk.f32.mxu1 %vm4294_vm10, %v4837_v63  ;;  %v2488_v48 = vld [vmem:[%s5124_s1 + $0xc38] sm:$0xff] }
 0x2f6   : > { %2099 = vst [vmem:[%s4026_s4 + $0x20] sm:$0xff] %v1447_v1  ;;  %3915 = vmatmul.mubr.msk.f32.gmra.mrb[8].mxu0 %vm4300_vm11, %v4304_v47  ;;  %3916 = vmatmul.mubr.msk.f32.vlgmr.msra.gmra.mrb[4].mxu1 %vm4294_vm10, %v4298_v45  ;;  %v3681_v45 = vpack.c.bf16 %v2394_v50, %v2393_v5  ;;  %v2395_v47 = vld [vmem:[%s5124_s1 + $0x950] sm:$0xff]  ;;  %v2454_v1 = vld [vmem:[%s5124_s1 + $0xb28] sm:$0xff]  ;;  %v2473_v5 = vld [vmem:[%s5124_s1 + $0xbc0] sm:$0xff] }
 0x2f7   : > { %3672 = vmatpush3.bf16.msra.mxu0 %v3669_v52  ;;  %3917 = vmatprep.mubr.msk.f32.mxu1 %vm4314_vm1, %v1444_v54  ;;  %v3685_v57 = vpack.c.bf16 %v2396_v53, %v2395_v47  ;;  %v2470_v52 = vld [vmem:[%s5124_s1 + $0xba8] sm:$0xff]  ;;  %v3735_v54 = vpack.c.bf16 %v2452_v49, %v2451_v44  ;;  %v2457_v53 = vld [vmem:[%s5124_s1 + $0xb40] sm:$0xff]  ;;  %v2492_v9 = vld [vmem:[%s5124_s1 + $0xc58] sm:$0xff] }
 0x2f8   : > { %3674 = vmatprep.subr.bf16.mxu0 %v3673_v2  ;;  %3272 = vmatprep.mubr.f32.mxu0 %v1453_v3  ;;  %v3737_v59 = vpack.c.bf16 %v2470_v52, %v2469_v51  ;;  %v2455_v3 = vld [vmem:[%s5124_s1 + $0xb30] sm:$0xff]  ;;  %v2474_v50 = vld [vmem:[%s5124_s1 + $0xbc8] sm:$0xff]  ;;  %v3781_v39 = vpack.c.bf16 %v2492_v9, %v2491_v38  ;;  %v2496_v49 = vld [vmem:[%s5124_s1 + $0xc78] sm:$0xff] }
 0x2f9   : > { %v3745_v47 = vpack.c.bf16 %v2474_v50, %v2473_v5  ;;  %v2495_v44 = vld [vmem:[%s5124_s1 + $0xc70] sm:$0xff]  ;;  %v1868_v52 = vld [vmem:[%s4046_s7 + $0x28] sm:$0xff] }
 0x2fa   : > { %3918 = vmatmul.mubr.msk.f32.gmra.mrb[6].mxu1 %vm4314_vm1, %v4318_v58  ;;  %v3689_v58 = vpack.c.bf16 %v2398_v56, %v2397_v60  ;;  %v2475_v60 = vld [vmem:[%s5124_s1 + $0xbd0] sm:$0xff]  ;;  %v2476_v56 = vld [vmem:[%s5124_s1 + $0xbd8] sm:$0xff]  ;;  %v3789_v51 = vpack.c.bf16 %v2496_v49, %v2495_v44 }
 0x2fb   : > { %3676 = vmatpush3.bf16.msra.mxu0 %v3673_v2  ;;  %v2471_v2 = vld [vmem:[%s5124_s1 + $0xbb0] sm:$0xff]  ;;  %v3749_v6 = vpack.c.bf16 %v2476_v56, %v2475_v60 }
 0x2fc   : > { %3678 = vmatprep.subr.bf16.mxu0 %v3677_v4  ;;  %v3741_v34 = vpack.c.bf16 %v2472_v32, %v2471_v2 }
 0x2ff   : > { %3680 = vmatpush3.bf16.msra.mxu0 %v3677_v4  ;;  %v2456_v4 = vld [vmem:[%s5124_s1 + $0xb38] sm:$0xff] }
 0x300   : > { %3682 = vmatprep.subr.bf16.mxu0 %v3681_v45 }
 0x303   : > { %3684 = vmatpush3.bf16.msra.mxu0 %v3681_v45  ;;  %v3743_v45 = vpack.c.bf16 %v2456_v4, %v2455_v3 }
 0x304   : > { %3686 = vmatprep.subr.bf16.mxu0 %v3685_v57 }
 0x307   : > { %3688 = vmatpush3.bf16.msra.mxu0 %v3685_v57  ;;  %v2458_v57 = vld [vmem:[%s5124_s1 + $0xb48] sm:$0xff] }
 0x308   : > { %3690 = vmatprep.subr.bf16.mxu0 %v3689_v58 }
 0x30b   : > { %3692 = vmatpush3.bf16.msra.mxu0 %v3689_v58  ;;  %v3747_v58 = vpack.c.bf16 %v2458_v57, %v2457_v53 }
 0x30c   : > { %3694 = vmatprep.subr.bf16.mxu0 %v3693_v7 }
 0x30f   : > { %3696 = vmatpush3.bf16.msra.mxu0 %v3693_v7  ;;  %v2460_v7 = vld [vmem:[%s5124_s1 + $0xb58] sm:$0xff] }
 0x310   : > { %3698 = vmatprep.subr.bf16.mxu0 %v3697_v12 }
 0x312   : > { %3273 = vmatmul.mubr.f32.vlgmr.msra.gmra.mrb[10].mxu0 %v1454_v15 }
 0x313   : > { %3700 = vmatpush3.bf16.msra.mxu0 %v3697_v12  ;;  %3307 = vmatprep.mubr.f32.mxu0 %v1454_v15  ;;  %v3751_v12 = vpack.c.bf16 %v2460_v7, %v2459_v10  ;;  %v2462_v15 = vld [vmem:[%s5124_s1 + $0xb68] sm:$0xff] }
 0x314   : > { %3702 = vmatprep.subr.bf16.mxu0 %v3701_v16  ;;  %v3755_v19 = vpack.c.bf16 %v2462_v15, %v2461_v14 }
 0x317   : > { %3704 = vmatpush3.bf16.msra.mxu0 %v3701_v16  ;;  %v2479_v16 = vld [vmem:[%s5124_s1 + $0xbf0] sm:$0xff] }
 0x318   : > { %3706 = vmatprep.subr.bf16.mxu0 %v3705_v20 }
 0x31b   : > { %3708 = vmatpush3.bf16.msra.mxu0 %v3705_v20  ;;  %v3757_v20 = vpack.c.bf16 %v2480_v18, %v2479_v16 }
 0x31c   : > { %3710 = vmatprep.subr.bf16.mxu0 %v3709_v23 }
 0x31f   : > { %3712 = vmatpush3.bf16.msra.mxu0 %v3709_v23  ;;  %v2481_v23 = vld [vmem:[%s5124_s1 + $0xc00] sm:$0xff] }
 0x320   : > { %3714 = vmatprep.subr.bf16.mxu0 %v3713_v25 }
 0x323   : > { %3716 = vmatpush3.bf16.msra.mxu0 %v3713_v25  ;;  %v3761_v25 = vpack.c.bf16 %v2482_v24, %v2481_v23 }
 0x324   : > { %3718 = vmatprep.subr.bf16.mxu0 %v3717_v28 }
 0x327   : > { %3720 = vmatpush3.bf16.msra.mxu0 %v3717_v28  ;;  %v3765_v28 = vpack.c.bf16 %v2484_v27, %v2483_v26 }
 0x328   : > { %3722 = vmatprep.subr.bf16.mxu0 %v3721_v31 }
 0x32b   : > { %3724 = vmatpush3.bf16.msra.mxu0 %v3721_v31  ;;  %v2486_v31 = vld [vmem:[%s5124_s1 + $0xc28] sm:$0xff] }
 0x32c   : > { %3726 = vmatprep.subr.bf16.mxu0 %v3725_v36  ;;  %v3769_v33 = vpack.c.bf16 %v2486_v31, %v2485_v30 }
 0x32f   : > { %3728 = vmatpush3.bf16.msra.mxu0 %v3725_v36  ;;  %v2487_v36 = vld [vmem:[%s5124_s1 + $0xc30] sm:$0xff] }
 0x330   : > { %3730 = vmatprep.subr.bf16.mxu0 %v3729_v13  ;;  %v3773_v17 = vpack.c.bf16 %v2488_v48, %v2487_v36  ;;  %v2490_v13 = vld [vmem:[%s5124_s1 + $0xc48] sm:$0xff] }
 0x332   : > { %3308 = vmatmul.mubr.f32.vlgmr.msra.gmra.mrb[10].mxu0 %v4962_v40 }
 0x333   : > { %3732 = vmatpush3.bf16.msra.mxu0 %v3731_v41  ;;  %3919 = vmatprep.mubr.msk.f32.mxu0 %vm4300_vm11, %v4817_v0  ;;  %v3739_v0 = vpack.c.bf16 %v2454_v1, %v2453_v61  ;;  %v2494_v41 = vld [vmem:[%s5124_s1 + $0xc68] sm:$0xff] }
 0x334   : > { %3734 = vmatprep.subr.bf16.mxu0 %v3733_v42 }
 0x337   : > { %3736 = vmatpush3.bf16.msra.mxu0 %v3735_v54 }
 0x338   : > { %3738 = vmatprep.subr.bf16.mxu0 %v3737_v59 }
 0x33b   : > { %3740 = vmatpush3.bf16.msra.mxu0 %v3739_v0 }
 0x33c   : > { %3742 = vmatprep.subr.bf16.mxu0 %v3741_v34 }
 0x33f   : > { %3744 = vmatpush3.bf16.msra.mxu0 %v3743_v45 }
 0x340   : > { %3746 = vmatprep.subr.bf16.mxu0 %v3745_v47 }
 0x343   : > { %3748 = vmatpush3.bf16.msra.mxu0 %v3747_v58 }
 0x344   : > { %3750 = vmatprep.subr.bf16.mxu0 %v3749_v6 }
 0x347   : > { %3752 = vmatpush3.bf16.msra.mxu0 %v3751_v12 }
 0x348   : > { %3754 = vmatprep.subr.bf16.mxu0 %v3753_v55 }
 0x34b   : > { %3756 = vmatpush3.bf16.msra.mxu0 %v3755_v19 }
 0x34c   : > { %3758 = vmatprep.subr.bf16.mxu0 %v3757_v20 }
 0x34f   : > { %3760 = vmatpush3.bf16.msra.mxu0 %v3759_v8 }
 0x350   : > { %3762 = vmatprep.subr.bf16.mxu0 %v3761_v25 }
 0x352   : > { %1855 = vmatmul.mubr.f32.vlgmr.msra.gmra.mrb[12].mxu0 %v1754_v29 }
 0x353   : > { %3920 = vmatprep.mubr.msk.f32.mxu0 %vm4294_vm10, %v4837_v63  ;;  %3764 = vmatpush3.bf16.msra.mxu0 %v3761_v25  ;;  %v2489_v63 = vld [vmem:[%s5124_s1 + $0xc40] sm:$0xff] }
 0x354   : > { %3766 = vmatprep.subr.bf16.mxu0 %v3765_v28  ;;  %v3777_v37 = vpack.c.bf16 %v2490_v13, %v2489_v63 }
 0x356   : > { %1860 = vmatmul.mubr.f32.gmra.mrb[14].mxu0 %v1756_v35 }
 0x357   : > { %3768 = vmatpush3.bf16.msra.mxu0 %v3765_v28  ;;  %3342 = vmatprep.mubr.f32.mxu0 %v4962_v40  ;;  %v2493_v40 = vld [vmem:[%s5124_s1 + $0xc60] sm:$0xff] }
 0x358   : > { %3770 = vmatprep.subr.bf16.mxu0 %v3769_v33  ;;  %v3785_v42 = vpack.c.bf16 %v2494_v41, %v2493_v40 }
 0x35b   : > { %3772 = vmatpush3.bf16.msra.mxu0 %v3769_v33 }
 0x35c   : > { %3774 = vmatprep.subr.bf16.mxu0 %v3773_v17 }
 0x35f   : > { %3776 = vmatpush3.bf16.msra.mxu0 %v3773_v17 }
 0x360   : > { %3778 = vmatprep.subr.bf16.mxu0 %v3777_v37 }
 0x363   : > { %3780 = vmatpush3.bf16.msra.mxu0 %v3777_v37 }
 0x364   : > { %3782 = vmatprep.subr.bf16.mxu0 %v3781_v39 }
 0x367   : > { %3784 = vmatpush3.bf16.msra.mxu0 %v3781_v39 }
 0x368   : > { %3786 = vmatprep.subr.bf16.mxu0 %v3785_v42 }
 0x36b   : > { %3788 = vmatpush3.bf16.msra.mxu0 %v3785_v42 }
 0x36c   : > { %3790 = vmatprep.subr.bf16.mxu0 %v3789_v51 }
 0x36f   : > { %3792 = vmatpush3.bf16.msra.mxu0 %v3789_v51 }
 0x372   : > { %3343 = vmatmul.mubr.f32.vlgmr.msra.gmra.mrb[10].mxu0 %v1868_v52 }
 0x3c5   : > { %v2753_v54 = vpop.f32.mrb[6].mxu0 }
 0x3c6   : > { %v2754_v59 = vpop.f32.mrb[7].mxu0 }
 0x3c7   : > { %v2755_v61 = vadd.f32 %v2754_v59, %v2753_v54 }
 0x3c9   : > { %v2756_v1 = vpop.f32.mrb[8].mxu0  ;;  %v2883_v2 = vpop.f32.mrb[4].mxu1 }
 0x3ca   : > { %v2757_v32 = vpop.f32.mrb[9].mxu0  ;;  %v2884_v0 = vpop.f32.mrb[5].mxu1 }
 0x3cb   : > { %v2758_v34 = vadd.f32 %v2757_v32, %v2756_v1  ;;  %v2885_v3 = vadd.f32 %v2884_v0, %v2883_v2 }
 0x3cd   : > { %v2886_v4 = vpop.f32.mrb[6].mxu1 }
 0x3ce   : > { %v2887_v5 = vpop.f32.mrb[7].mxu1 }
 0x3cf   : > { %v2888_v50 = vadd.f32 %v2887_v5, %v2886_v4 }
 0x425   : > { %v2827_v45 = vpop.f32.mrb[12].mxu0 }
 0x426   : > { %v2828_v47 = vpop.f32.mrb[13].mxu0 }
 0x427   : > { %v2829_v53 = vadd.f32 %v2828_v47, %v2827_v45 }
 0x429   : > { %v2830_v57 = vpop.f32.mrb[14].mxu0  ;;  %v3827_v60 = vadd.f32 %v2829_v53, %v2755_v61 }
 0x42a   : > { %v2831_v56 = vpop.f32.mrb[15].mxu0 }
 0x42b   : > { %v2832_v58 = vadd.f32 %v2831_v56, %v2830_v57 }
 0x42d   : > { %v3825_v6 = vadd.f32 %v2832_v58, %v2758_v34 }
 0x445   : > { %v3344_v10 = vpop.f32.mrb[10].mxu0 }
 0x446   : > { %v3826_v7 = vadd.f32 %v3825_v6, %v3344_v10  ;;  %v1952_v62 = vpop.f32.mrb[11].mxu0 }
 0x447   : > { %v3828_v12 = vadd.f32 %v3827_v60, %v1952_v62 }
 0x448   : > { %v2075_v55 = vadd.f32 %v3826_v7, %v2888_v50 }
 0x449   : > { %v2074_v14 = vadd.f32 %v3828_v12, %v2885_v3 }
 0x44a   : > { %v2085_v15 = vadd.f32 %v2530_v11, %v2075_v55 }
 0x44b   : > { %v2084_v16 = vadd.f32 %v2530_v11, %v2074_v14 }
 0x44c   : > { %v2087_v18 = vmax.f32 %v2085_v15, 0.0 }
 0x44d   : > { %v2086_v19 = vmax.f32 %v2084_v16, 0.0 }
 0x44e   : > { %v2089_v20 = vsel %vm4294_vm10, %v2087_v18, 0.0 }
 0x44f   : > { %2091 = vst [vmem:[%s4026_s4 + $0x28] sm:$0xff] %v2089_v20  ;;  %v2088_v21 = vsel %vm4300_vm11, %v2086_v19, 0.0 }
 0x450   : > { %2090 = vst [vmem:[%s4026_s4 + $0x10] sm:$0xff] %v2088_v21 }
 0x451 PF: > { %s13_s16 = sadd.s32 1, %s3961_s16   ;;  %s5135_s12 = smov %s3953_s14 }
 0x452   : > { %p10_p11 = scmp.ge.s32.totalorder %s13_s16, 8   ;;  %s5136_s13 = smov %s3957_s15 }
 0x453   : > { %s5137_s14 = smov %s5140_s17  ;;  %s5138_s15 = smov %s5144_s18 }
 0x454   :  { %12 = sbr.rel (!%p10_p11) target bundleno = 3 (0x3), region = 166 }
 0x45b   :  { %2132 = vsyncmov [#allocation4] }
 0x45e   :  { %s2133_s4 = vpop.sfrf %2132 }
 0x45f   :  { %p2533_p12 = scmp.ne.s32.totalorder %s2133_s4, 0 }
 0x461   :  { %2137 = shalt.err (%p2533_p12)  }
 0x462   :  { %2139 = vsyncmov [#allocation4 + $0x1] }
 0x465   :  { %s2140_s28 = vpop.sfrf %2139 }
 0x466   :  { %p2534_p13 = scmp.ne.s32.totalorder %s2140_s28, 0 }
 0x468   :  { %2144 = shalt.err (%p2534_p13)  }

</bundles_post_ra>
